<compile_context>
chip_gen: v5e
topology: v5e:2x2
jax: 0.10.0
libtpu: 0.0.40
codegen_flags: <defaults>
</compile_context>

<pallas_src>
import jax
import jax.numpy as jnp
from jax.experimental import pallas as pl
from jax.experimental.pallas import tpu as pltpu


def _round_up(x, m):
    return ((x + m - 1) // m) * m


def dan_kernel(v_ref, w_ref, vm_ref, wm_ref,
               wt_ref, bt_ref,
               wcs_ref, wca_ref, bc_ref,
               sv_ref, sw_ref):
    # v_ref: (Bb, Lv, E), w_ref: (Bb, Lw, E)
    # vm_ref: (Bb, Lv, 1), wm_ref: (Bb, Lw, 1)
    # wt_ref: (E, Ha), bt_ref: (1, Ha)
    # wcs_ref/wca_ref: (E, Hc), bc_ref: (1, Hc)
    # sv_ref/sw_ref: (Bb, Hc)
    Bb, Lv, E = v_ref.shape
    _, Lw, _ = w_ref.shape
    Hc = wcs_ref.shape[1]

    v = v_ref[...] * vm_ref[...]              # masked_v  (Bb, Lv, E)
    w = w_ref[...] * wm_ref[...]              # masked_w  (Bb, Lw, E)

    # Fold the whole batch block into one big matmul for the transform.
    v2 = v.reshape(Bb * Lv, E)
    w2 = w.reshape(Bb * Lw, E)

    wt = wt_ref[...]
    bt = bt_ref[...]
    t_v = jnp.maximum(
        jnp.dot(v2, wt, preferred_element_type=jnp.float32) + bt, 0.0)   # (Bb*Lv, Ha)
    t_w = jnp.maximum(
        jnp.dot(w2, wt, preferred_element_type=jnp.float32) + bt, 0.0)   # (Bb*Lw, Ha)
    t_v = t_v.reshape(Bb, Lv, -1)
    t_w = t_w.reshape(Bb, Lw, -1)

    # sim[b, i, j] = <t_v[b, i], t_w[b, j]>  — no transpose materialized.
    sim = jnp.einsum('bih,bjh->bij', t_v, t_w,
                     preferred_element_type=jnp.float32)                 # (Bb, Lv, Lw)

    # Row softmax (torch dim=2) and column softmax (torch dim=1).
    alpha_v = jax.nn.softmax(sim, axis=2)                                # (Bb, Lv, Lw)
    alpha_c = jax.nn.softmax(sim, axis=1)                                # (Bb, Lv, Lw)

    # Alignments: consume the column softmax by contracting the Lv axis
    # directly (no transpose of alpha_c).
    w_align = jnp.einsum('bij,bje->bie', alpha_v, w,
                         preferred_element_type=jnp.float32)             # (Bb, Lv, E)
    v_align = jnp.einsum('bij,bie->bje', alpha_c, v,
                         preferred_element_type=jnp.float32)             # (Bb, Lw, E)

    # CompareLayer: Linear(concat(s, align)) == s @ Wc_s + align @ Wc_a
    wcs = wcs_ref[...]
    wca = wca_ref[...]
    bc = bc_ref[...]
    z_v = jnp.maximum(
        jnp.dot(v2, wcs, preferred_element_type=jnp.float32)
        + jnp.dot(w_align.reshape(Bb * Lv, E), wca,
                  preferred_element_type=jnp.float32)
        + bc, 0.0)                                                       # (Bb*Lv, Hc)
    z_w = jnp.maximum(
        jnp.dot(w2, wcs, preferred_element_type=jnp.float32)
        + jnp.dot(v_align.reshape(Bb * Lw, E), wca,
                  preferred_element_type=jnp.float32)
        + bc, 0.0)                                                       # (Bb*Lw, Hc)

    # Sequence-sum pooling; dense (Bb, Hc) stores (final 3-way projection is
    # done in the wrapper for a lane-dense output path).
    sv_ref[...] = jnp.sum(z_v.reshape(Bb, Lv, Hc), axis=1)               # (Bb, Hc)
    sw_ref[...] = jnp.sum(z_w.reshape(Bb, Lw, Hc), axis=1)               # (Bb, Hc)


def decomposable_attention(v, w, v_mask, w_mask, params, *, block_b=32):
    B, Lv, E = v.shape
    _, Lw, _ = w.shape
    Hc = params["wcs"].shape[1]

    # Batch tile: multiple of 8 (sublane) pairs per program.  Pad the batch so
    # the grid divides evenly (padded pairs are all-zero -> finite math, then
    # sliced off).
    Bblk = min(_round_up(block_b, 8), _round_up(B, 8))
    Bp = _round_up(B, Bblk)
    pad = Bp - B
    if pad:
        v = jnp.pad(v, ((0, pad), (0, 0), (0, 0)))
        w = jnp.pad(w, ((0, pad), (0, 0), (0, 0)))
        v_mask = jnp.pad(v_mask, ((0, pad), (0, 0)))
        w_mask = jnp.pad(w_mask, ((0, pad), (0, 0)))

    vm = v_mask[..., None].astype(v.dtype)   # (Bp, Lv, 1)
    wm = w_mask[..., None].astype(w.dtype)   # (Bp, Lw, 1)

    def batch_spec(tail):
        return pl.BlockSpec((Bblk,) + tail, lambda b: (b,) + (0,) * len(tail))

    def weight_spec(shape):
        return pl.BlockSpec(shape, lambda b: tuple(0 for _ in shape))

    in_specs = [
        batch_spec((Lv, E)),                  # v
        batch_spec((Lw, E)),                  # w
        batch_spec((Lv, 1)),                  # v_mask
        batch_spec((Lw, 1)),                  # w_mask
        weight_spec(params["wt"].shape),      # attention transform weight (E, Ha)
        weight_spec(params["bt"].shape),      # attention transform bias   (1, Ha)
        weight_spec(params["wcs"].shape),     # compare weight, "s" half   (E, Hc)
        weight_spec(params["wca"].shape),     # compare weight, align half (E, Hc)
        weight_spec(params["bc"].shape),      # compare bias               (1, Hc)
    ]
    out_specs = (
        pl.BlockSpec((Bblk, Hc), lambda b: (b, 0)),   # sv pooled
        pl.BlockSpec((Bblk, Hc), lambda b: (b, 0)),   # sw pooled
    )
    out_shape = (
        jax.ShapeDtypeStruct((Bp, Hc), jnp.float32),
        jax.ShapeDtypeStruct((Bp, Hc), jnp.float32),
    )

    sv, sw = pl.pallas_call(
        dan_kernel,
        out_shape=out_shape,
        grid_spec=pltpu.PrefetchScalarGridSpec(
            num_scalar_prefetch=0,
            grid=(Bp // Bblk,),
            in_specs=in_specs,
            out_specs=out_specs,
        ),
        compiler_params=pltpu.CompilerParams(
            dimension_semantics=("parallel",)),   # independent pairs -> megacore
    )(v, w, vm, wm,
      params["wt"], params["bt"],
      params["wcs"], params["wca"], params["bc"])

    # Final OutLayer projection (2*Hc -> 3) + bias in plain JAX: trivial work,
    # keeps the kernel's store path lane-dense.
    logits = sv @ params["wov"] + sw @ params["wow"] + params["bo"]
    return logits[:B]   # (B, 3)


def reference(v, w, v_mask, w_mask, p):
    """Pure-JAX replica of the PyTorch forward for verification."""
    mv = v * v_mask[..., None]
    mw = w * w_mask[..., None]
    tv = jax.nn.relu(mv @ p["wt"] + p["bt"][0])
    tw = jax.nn.relu(mw @ p["wt"] + p["bt"][0])
    sim = jnp.einsum('bie,bje->bij', tv, tw)
    alpha_v = jax.nn.softmax(sim, axis=2)
    alpha_w = jnp.swapaxes(jax.nn.softmax(sim, axis=1), 1, 2)
    w_align = jnp.einsum('bij,bje->bie', alpha_v, mw)
    v_align = jnp.einsum('bji,bie->bje', alpha_w, mv)
    z_v = jax.nn.relu(mv @ p["wcs"] + w_align @ p["wca"] + p["bc"][0])
    z_w = jax.nn.relu(mw @ p["wcs"] + v_align @ p["wca"] + p["bc"][0])
    return z_v.sum(1) @ p["wov"] + z_w.sum(1) @ p["wow"] + p["bo"][0]


if __name__ == "__main__":
    # Small shapes consistent with the module (batch chosen to exercise both
    # batch-blocking with grid > 1 and the padding path).
    B, Lv, Lw = 12, 8, 8
    E, Ha, Hc = 32, 32, 32        # emb_size, attn_hidden, compare_hidden

    key = jax.random.PRNGKey(0)
    keys = jax.random.split(key, 12)

    v = jax.random.normal(keys[0], (B, Lv, E), dtype=jnp.float32)
    w = jax.random.normal(keys[1], (B, Lw, E), dtype=jnp.float32)
    v_mask = (jax.random.uniform(keys[2], (B, Lv)) > 0.25).astype(jnp.float32)
    w_mask = (jax.random.uniform(keys[3], (B, Lw)) > 0.25).astype(jnp.float32)

    # Weights pre-transposed to (in, out); concatenation-Linear weights split
    # into their two input halves.
    s = 0.1
    params = {
        "wt":  s * jax.random.normal(keys[4],  (E, Ha), dtype=jnp.float32),
        "bt":  s * jax.random.normal(keys[5],  (1, Ha), dtype=jnp.float32),
        "wcs": s * jax.random.normal(keys[6],  (E, Hc), dtype=jnp.float32),
        "wca": s * jax.random.normal(keys[7],  (E, Hc), dtype=jnp.float32),
        "bc":  s * jax.random.normal(keys[8],  (1, Hc), dtype=jnp.float32),
        "wov": s * jax.random.normal(keys[9],  (Hc, 3), dtype=jnp.float32),
        "wow": s * jax.random.normal(keys[10], (Hc, 3), dtype=jnp.float32),
        "bo":  s * jax.random.normal(keys[11], (1, 3), dtype=jnp.float32),
    }

    out = decomposable_attention(v, w, v_mask, w_mask, params, block_b=8)
    out = jax.block_until_ready(out)

    ref = reference(v, w, v_mask, w_mask, params)
    assert out.shape == (B, 3), out.shape
    assert jnp.allclose(out, ref, rtol=1e-4, atol=1e-4), (out, ref)

    print("KERNEL_OK")
</pallas_src>

<mosaic_0001>
module attributes {stable_mosaic.version = 11 : i64} {
  func.func @dan_kernel(%arg0: i32, %arg1: memref<8x8x32xf32, #tpu.memory_space<vmem>>, %arg2: memref<8x8x32xf32, #tpu.memory_space<vmem>>, %arg3: memref<8x8x1xf32, #tpu.memory_space<vmem>>, %arg4: memref<8x8x1xf32, #tpu.memory_space<vmem>>, %arg5: memref<32x32xf32, #tpu.memory_space<vmem>>, %arg6: memref<1x32xf32, #tpu.memory_space<vmem>>, %arg7: memref<32x32xf32, #tpu.memory_space<vmem>>, %arg8: memref<32x32xf32, #tpu.memory_space<vmem>>, %arg9: memref<1x32xf32, #tpu.memory_space<vmem>>, %arg10: memref<8x32xf32, #tpu.memory_space<vmem>>, %arg11: memref<8x32xf32, #tpu.memory_space<vmem>>) attributes {dimension_semantics = [#tpu.dimension_semantics<parallel>], iteration_bounds = array<i64: 2>, scalar_prefetch = 0 : i64, scratch_operands = 0 : i64, tpu.core_type = #tpu.core_type<tc>, window_params = [{transform_indices = @transform_0, window_bounds = array<i64: 8, 8, 32>}, {transform_indices = @transform_1, window_bounds = array<i64: 8, 8, 32>}, {transform_indices = @transform_2, window_bounds = array<i64: 8, 8, 1>}, {transform_indices = @transform_3, window_bounds = array<i64: 8, 8, 1>}, {pipeline_mode = #tpu.pipeline_mode<synchronous>, transform_indices = @transform_4, window_bounds = array<i64: 32, 32>}, {pipeline_mode = #tpu.pipeline_mode<synchronous>, transform_indices = @transform_5, window_bounds = array<i64: 1, 32>}, {pipeline_mode = #tpu.pipeline_mode<synchronous>, transform_indices = @transform_6, window_bounds = array<i64: 32, 32>}, {pipeline_mode = #tpu.pipeline_mode<synchronous>, transform_indices = @transform_7, window_bounds = array<i64: 32, 32>}, {pipeline_mode = #tpu.pipeline_mode<synchronous>, transform_indices = @transform_8, window_bounds = array<i64: 1, 32>}, {transform_indices = @transform_9, window_bounds = array<i64: 8, 32>}, {transform_indices = @transform_10, window_bounds = array<i64: 8, 32>}]} {
    %c0 = arith.constant 0 : index
    %c0_0 = arith.constant 0 : index
    %c0_1 = arith.constant 0 : index
    %0 = vector.load %arg1[%c0, %c0_0, %c0_1] : memref<8x8x32xf32, #tpu.memory_space<vmem>>, vector<8x8x32xf32>
    %c0_2 = arith.constant 0 : index
    %c0_3 = arith.constant 0 : index
    %c0_4 = arith.constant 0 : index
    %1 = vector.load %arg3[%c0_2, %c0_3, %c0_4] : memref<8x8x1xf32, #tpu.memory_space<vmem>>, vector<8x8x1xf32>
    %2 = vector.broadcast %1 : vector<8x8x1xf32> to vector<8x8x32xf32>
    %3 = arith.mulf %0, %2 : vector<8x8x32xf32>
    %c0_5 = arith.constant 0 : index
    %c0_6 = arith.constant 0 : index
    %c0_7 = arith.constant 0 : index
    %4 = vector.load %arg2[%c0_5, %c0_6, %c0_7] : memref<8x8x32xf32, #tpu.memory_space<vmem>>, vector<8x8x32xf32>
    %c0_8 = arith.constant 0 : index
    %c0_9 = arith.constant 0 : index
    %c0_10 = arith.constant 0 : index
    %5 = vector.load %arg4[%c0_8, %c0_9, %c0_10] : memref<8x8x1xf32, #tpu.memory_space<vmem>>, vector<8x8x1xf32>
    %6 = vector.broadcast %5 : vector<8x8x1xf32> to vector<8x8x32xf32>
    %7 = arith.mulf %4, %6 : vector<8x8x32xf32>
    %8 = vector.shape_cast %3 : vector<8x8x32xf32> to vector<64x32xf32>
    %9 = vector.shape_cast %7 : vector<8x8x32xf32> to vector<64x32xf32>
    %c0_11 = arith.constant 0 : index
    %c0_12 = arith.constant 0 : index
    %10 = vector.load %arg5[%c0_11, %c0_12] : memref<32x32xf32, #tpu.memory_space<vmem>>, vector<32x32xf32>
    %c0_13 = arith.constant 0 : index
    %c0_14 = arith.constant 0 : index
    %11 = vector.load %arg6[%c0_13, %c0_14] : memref<1x32xf32, #tpu.memory_space<vmem>>, vector<1x32xf32>
    %cst = arith.constant dense<0.000000e+00> : vector<64x32xf32>
    %12 = tpu.matmul %8, %10, %cst {dimension_numbers = #tpu.dot_dimension_numbers<[1], [0], [0], [1], [0, 0, 1, 1], [], []>} : vector<64x32xf32>, vector<32x32xf32>, vector<64x32xf32> -> vector<64x32xf32>
    %13 = vector.broadcast %11 : vector<1x32xf32> to vector<64x32xf32>
    %14 = arith.addf %12, %13 : vector<64x32xf32>
    %cst_15 = arith.constant 0.000000e+00 : f32
    %15 = vector.broadcast %cst_15 : f32 to vector<64x32xf32>
    %16 = arith.maximumf %14, %15 : vector<64x32xf32>
    %cst_16 = arith.constant dense<0.000000e+00> : vector<64x32xf32>
    %17 = tpu.matmul %9, %10, %cst_16 {dimension_numbers = #tpu.dot_dimension_numbers<[1], [0], [0], [1], [0, 0, 1, 1], [], []>} : vector<64x32xf32>, vector<32x32xf32>, vector<64x32xf32> -> vector<64x32xf32>
    %18 = vector.broadcast %11 : vector<1x32xf32> to vector<64x32xf32>
    %19 = arith.addf %17, %18 : vector<64x32xf32>
    %cst_17 = arith.constant 0.000000e+00 : f32
    %20 = vector.broadcast %cst_17 : f32 to vector<64x32xf32>
    %21 = arith.maximumf %19, %20 : vector<64x32xf32>
    %22 = vector.shape_cast %16 : vector<64x32xf32> to vector<8x8x32xf32>
    %23 = vector.shape_cast %21 : vector<64x32xf32> to vector<8x8x32xf32>
    "tpu.trace_start"() <{level = 10 : i32, message = "bih,bjh->bij"}> : () -> ()
    %cst_18 = arith.constant dense<0.000000e+00> : vector<8x8x8xf32>
    %24 = tpu.matmul %22, %23, %cst_18 {dimension_numbers = #tpu.dot_dimension_numbers<[2], [2], [1], [1], [0, 0, 0, 1, 1, 1], [0], [0]>} : vector<8x8x32xf32>, vector<8x8x32xf32>, vector<8x8x8xf32> -> vector<8x8x8xf32>
    "tpu.trace_stop"() : () -> ()
    %cst_19 = arith.constant dense<0xFF800000> : vector<8x8xf32>
    %25 = vector.multi_reduction <maximumf>, %24, %cst_19 [2] : vector<8x8x8xf32> to vector<8x8xf32>
    %cst_20 = arith.constant 0xFF800000 : f32
    %26 = vector.broadcast %cst_20 : f32 to vector<8x8xf32>
    %27 = arith.maximumf %26, %25 : vector<8x8xf32>
    %28 = vector.shape_cast %27 : vector<8x8xf32> to vector<8x8x1xf32>
    %29 = vector.broadcast %28 : vector<8x8x1xf32> to vector<8x8x8xf32>
    %30 = arith.subf %24, %29 : vector<8x8x8xf32>
    %31 = math.exp %30 : vector<8x8x8xf32>
    %cst_21 = arith.constant dense<0.000000e+00> : vector<8x8xf32>
    %32 = vector.multi_reduction <add>, %31, %cst_21 [2] : vector<8x8x8xf32> to vector<8x8xf32>
    %33 = vector.shape_cast %32 : vector<8x8xf32> to vector<8x8x1xf32>
    %34 = vector.broadcast %33 : vector<8x8x1xf32> to vector<8x8x8xf32>
    %35 = arith.divf %31, %34 : vector<8x8x8xf32>
    %cst_22 = arith.constant dense<0xFF800000> : vector<8x8xf32>
    %36 = vector.multi_reduction <maximumf>, %24, %cst_22 [1] : vector<8x8x8xf32> to vector<8x8xf32>
    %cst_23 = arith.constant 0xFF800000 : f32
    %37 = vector.broadcast %cst_23 : f32 to vector<8x8xf32>
    %38 = arith.maximumf %37, %36 : vector<8x8xf32>
    %39 = vector.shape_cast %38 : vector<8x8xf32> to vector<8x1x8xf32>
    %40 = vector.broadcast %39 : vector<8x1x8xf32> to vector<8x8x8xf32>
    %41 = arith.subf %24, %40 : vector<8x8x8xf32>
    %42 = math.exp %41 : vector<8x8x8xf32>
    %cst_24 = arith.constant dense<0.000000e+00> : vector<8x8xf32>
    %43 = vector.multi_reduction <add>, %42, %cst_24 [1] : vector<8x8x8xf32> to vector<8x8xf32>
    %44 = vector.shape_cast %43 : vector<8x8xf32> to vector<8x1x8xf32>
    %45 = vector.broadcast %44 : vector<8x1x8xf32> to vector<8x8x8xf32>
    %46 = arith.divf %42, %45 : vector<8x8x8xf32>
    "tpu.trace_start"() <{level = 10 : i32, message = "bij,bje->bie"}> : () -> ()
    %cst_25 = arith.constant dense<0.000000e+00> : vector<8x8x32xf32>
    %47 = tpu.matmul %35, %7, %cst_25 {dimension_numbers = #tpu.dot_dimension_numbers<[2], [1], [1], [2], [0, 0, 0, 1, 1, 2], [0], [0]>} : vector<8x8x8xf32>, vector<8x8x32xf32>, vector<8x8x32xf32> -> vector<8x8x32xf32>
    "tpu.trace_stop"() : () -> ()
    "tpu.trace_start"() <{level = 10 : i32, message = "bij,bie->bje"}> : () -> ()
    %cst_26 = arith.constant dense<0.000000e+00> : vector<8x8x32xf32>
    %48 = tpu.matmul %46, %3, %cst_26 {dimension_numbers = #tpu.dot_dimension_numbers<[1], [1], [2], [2], [0, 0, 0, 2, 1, 2], [0], [0]>} : vector<8x8x8xf32>, vector<8x8x32xf32>, vector<8x8x32xf32> -> vector<8x8x32xf32>
    "tpu.trace_stop"() : () -> ()
    %c0_27 = arith.constant 0 : index
    %c0_28 = arith.constant 0 : index
    %49 = vector.load %arg7[%c0_27, %c0_28] : memref<32x32xf32, #tpu.memory_space<vmem>>, vector<32x32xf32>
    %c0_29 = arith.constant 0 : index
    %c0_30 = arith.constant 0 : index
    %50 = vector.load %arg8[%c0_29, %c0_30] : memref<32x32xf32, #tpu.memory_space<vmem>>, vector<32x32xf32>
    %c0_31 = arith.constant 0 : index
    %c0_32 = arith.constant 0 : index
    %51 = vector.load %arg9[%c0_31, %c0_32] : memref<1x32xf32, #tpu.memory_space<vmem>>, vector<1x32xf32>
    %cst_33 = arith.constant dense<0.000000e+00> : vector<64x32xf32>
    %52 = tpu.matmul %8, %49, %cst_33 {dimension_numbers = #tpu.dot_dimension_numbers<[1], [0], [0], [1], [0, 0, 1, 1], [], []>} : vector<64x32xf32>, vector<32x32xf32>, vector<64x32xf32> -> vector<64x32xf32>
    %53 = vector.shape_cast %47 : vector<8x8x32xf32> to vector<64x32xf32>
    %cst_34 = arith.constant dense<0.000000e+00> : vector<64x32xf32>
    %54 = tpu.matmul %53, %50, %cst_34 {dimension_numbers = #tpu.dot_dimension_numbers<[1], [0], [0], [1], [0, 0, 1, 1], [], []>} : vector<64x32xf32>, vector<32x32xf32>, vector<64x32xf32> -> vector<64x32xf32>
    %55 = arith.addf %52, %54 : vector<64x32xf32>
    %56 = vector.broadcast %51 : vector<1x32xf32> to vector<64x32xf32>
    %57 = arith.addf %55, %56 : vector<64x32xf32>
    %cst_35 = arith.constant 0.000000e+00 : f32
    %58 = vector.broadcast %cst_35 : f32 to vector<64x32xf32>
    %59 = arith.maximumf %57, %58 : vector<64x32xf32>
    %cst_36 = arith.constant dense<0.000000e+00> : vector<64x32xf32>
    %60 = tpu.matmul %9, %49, %cst_36 {dimension_numbers = #tpu.dot_dimension_numbers<[1], [0], [0], [1], [0, 0, 1, 1], [], []>} : vector<64x32xf32>, vector<32x32xf32>, vector<64x32xf32> -> vector<64x32xf32>
    %61 = vector.shape_cast %48 : vector<8x8x32xf32> to vector<64x32xf32>
    %cst_37 = arith.constant dense<0.000000e+00> : vector<64x32xf32>
    %62 = tpu.matmul %61, %50, %cst_37 {dimension_numbers = #tpu.dot_dimension_numbers<[1], [0], [0], [1], [0, 0, 1, 1], [], []>} : vector<64x32xf32>, vector<32x32xf32>, vector<64x32xf32> -> vector<64x32xf32>
    %63 = arith.addf %60, %62 : vector<64x32xf32>
    %64 = vector.broadcast %51 : vector<1x32xf32> to vector<64x32xf32>
    %65 = arith.addf %63, %64 : vector<64x32xf32>
    %cst_38 = arith.constant 0.000000e+00 : f32
    %66 = vector.broadcast %cst_38 : f32 to vector<64x32xf32>
    %67 = arith.maximumf %65, %66 : vector<64x32xf32>
    %68 = vector.shape_cast %59 : vector<64x32xf32> to vector<8x8x32xf32>
    %cst_39 = arith.constant dense<0.000000e+00> : vector<8x32xf32>
    %69 = vector.multi_reduction <add>, %68, %cst_39 [1] : vector<8x8x32xf32> to vector<8x32xf32>
    %c0_40 = arith.constant 0 : index
    %c0_41 = arith.constant 0 : index
    %70 = vector.load %arg10[%c0_40, %c0_41] : memref<8x32xf32, #tpu.memory_space<vmem>>, vector<8x32xf32>
    tpu.vector_store %arg10[%c0_40, %c0_41], %69 {strides = array<i32>} : memref<8x32xf32, #tpu.memory_space<vmem>>, vector<8x32xf32>,
    %71 = vector.shape_cast %67 : vector<64x32xf32> to vector<8x8x32xf32>
    %cst_42 = arith.constant dense<0.000000e+00> : vector<8x32xf32>
    %72 = vector.multi_reduction <add>, %71, %cst_42 [1] : vector<8x8x32xf32> to vector<8x32xf32>
    %c0_43 = arith.constant 0 : index
    %c0_44 = arith.constant 0 : index
    %73 = vector.load %arg11[%c0_43, %c0_44] : memref<8x32xf32, #tpu.memory_space<vmem>>, vector<8x32xf32>
    tpu.vector_store %arg11[%c0_43, %c0_44], %72 {strides = array<i32>} : memref<8x32xf32, #tpu.memory_space<vmem>>, vector<8x32xf32>,
    return
  }
  func.func @transform_0(%arg0: i32) -> (i32, i32, i32) {
    %c0_i32 = arith.constant 0 : i32
    %c0_i32_0 = arith.constant 0 : i32
    %c0_i32_1 = arith.constant 0 : i32
    return %arg0, %c0_i32, %c0_i32_0 : i32, i32, i32
  }
  func.func @transform_1(%arg0: i32) -> (i32, i32, i32) {
    %c0_i32 = arith.constant 0 : i32
    %c0_i32_0 = arith.constant 0 : i32
    %c0_i32_1 = arith.constant 0 : i32
    return %arg0, %c0_i32, %c0_i32_0 : i32, i32, i32
  }
  func.func @transform_2(%arg0: i32) -> (i32, i32, i32) {
    %c0_i32 = arith.constant 0 : i32
    %c0_i32_0 = arith.constant 0 : i32
    %c0_i32_1 = arith.constant 0 : i32
    return %arg0, %c0_i32, %c0_i32_0 : i32, i32, i32
  }
  func.func @transform_3(%arg0: i32) -> (i32, i32, i32) {
    %c0_i32 = arith.constant 0 : i32
    %c0_i32_0 = arith.constant 0 : i32
    %c0_i32_1 = arith.constant 0 : i32
    return %arg0, %c0_i32, %c0_i32_0 : i32, i32, i32
  }
  func.func @transform_4(%arg0: i32) -> (i32, i32) {
    %c0_i32 = arith.constant 0 : i32
    %c0_i32_0 = arith.constant 0 : i32
    %c0_i32_1 = arith.constant 0 : i32
    return %c0_i32, %c0_i32_0 : i32, i32
  }
  func.func @transform_5(%arg0: i32) -> (i32, i32) {
    %c0_i32 = arith.constant 0 : i32
    %c0_i32_0 = arith.constant 0 : i32
    %c0_i32_1 = arith.constant 0 : i32
    return %c0_i32, %c0_i32_0 : i32, i32
  }
  func.func @transform_6(%arg0: i32) -> (i32, i32) {
    %c0_i32 = arith.constant 0 : i32
    %c0_i32_0 = arith.constant 0 : i32
    %c0_i32_1 = arith.constant 0 : i32
    return %c0_i32, %c0_i32_0 : i32, i32
  }
  func.func @transform_7(%arg0: i32) -> (i32, i32) {
    %c0_i32 = arith.constant 0 : i32
    %c0_i32_0 = arith.constant 0 : i32
    %c0_i32_1 = arith.constant 0 : i32
    return %c0_i32, %c0_i32_0 : i32, i32
  }
  func.func @transform_8(%arg0: i32) -> (i32, i32) {
    %c0_i32 = arith.constant 0 : i32
    %c0_i32_0 = arith.constant 0 : i32
    %c0_i32_1 = arith.constant 0 : i32
    return %c0_i32, %c0_i32_0 : i32, i32
  }
  func.func @transform_9(%arg0: i32) -> (i32, i32) {
    %c0_i32 = arith.constant 0 : i32
    %c0_i32_0 = arith.constant 0 : i32
    return %arg0, %c0_i32 : i32, i32
  }
  func.func @transform_10(%arg0: i32) -> (i32, i32) {
    %c0_i32 = arith.constant 0 : i32
    %c0_i32_0 = arith.constant 0 : i32
    return %arg0, %c0_i32 : i32, i32
  }
}

</mosaic_0001>

<bundles_post_ra>
// kernel: tpu_custom_call.1
= control target key start
LH: loop header
LB: loop body
LE: loop exit
PB: predicated region body
PF: predicated region fallthrough
CT: control target
= control target key end

     0   :  { %s3843_s0 = inlined_call_operand.vmem [shape: f32[16,8,32], index: 0, kind: input, shape index: {}]   ;;  %s3844_s1 = inlined_call_operand.vmem [shape: f32[16,8,32], index: 1, kind: input, shape index: {}]   ;;  %s3845_s2 = inlined_call_operand.vmem [shape: f32[16,8,1], index: 2, kind: input, shape index: {}]   ;;  %s3846_s3 = inlined_call_operand.vmem [shape: f32[16,8,1], index: 3, kind: input, shape index: {}]   ;;  %s3847_s4 = inlined_call_operand.hbm [shape: f32[32,32], index: 4, kind: input, shape index: {}]   ;;  %s3848_s5 = inlined_call_operand.vmem [shape: f32[1,32], index: 5, kind: input, shape index: {}]   ;;  %s3849_s6 = inlined_call_operand.hbm [shape: f32[32,32], index: 6, kind: input, shape index: {}]   ;;  %s3850_s7 = inlined_call_operand.hbm [shape: f32[32,32], index: 7, kind: input, shape index: {}]   ;;  %s3851_s8 = inlined_call_operand.vmem [shape: f32[1,32], index: 8, kind: input, shape index: {}]   ;;  %s3852_s9 = inlined_call_operand.hbm [shape: f32[16,32], index: 9, kind: output, shape index: {0}]   ;;  %s3853_s10 = inlined_call_operand.hbm [shape: f32[16,32], index: 10, kind: output, shape index: {1}]  }
   0x1   :  { %3856 = sst [smem:[#allocation18_spill]] %s3847_s4 }
   0x2   :  { %3857 = sst [smem:[#allocation19_spill]] %s3849_s6 }
   0x3   :  { %16 = vsyncpa [#allocation3], 0 }
   0x4   :  { %17 = vsyncpa [#allocation6], 0 }
   0x5   :  { %18 = vsyncpa [#allocation4], 0 }
   0x6   :  { %20 = vsyncpa [#allocation4 + $0x1], 0 }
   0x7   :  { %21 = vsyncpa [#allocation10], 0 }
   0x8   :  { %23 = vsyncpa [#allocation10 + $0x1], 0  ;;  %s3155_s13 = smov 0   ;;  %s3157_s14 = smov 0  }
   0x9   :  { %s3159_s15 = smov 0   ;;  %s3161_s16 = smov 0  }
   0xa LB: > { %3858 = sst [smem:[#allocation15_spill]] %s3088_s15  ;;  %s3176_s17 = sadd.s32 4294967295, %s3092_s16   ;;  %s3092_s16 = sphi %s3161_s16, %s3882_s16   ;;  %s3088_s15 = sphi %s3159_s15, %s3879_s15   ;;  %s3084_s14 = sphi %s3157_s14, %s3881_s14   ;;  %s3080_s13 = sphi %s3155_s13, %s3880_s13  }
   0xb   : > { %s2646_s18 = sadd.s32 4294967294, %s3092_s16   ;;  %s3180_s19 = sadd.s32 1, %s3092_s16  }
   0xc   : > { %s245_s20 = sadd.s32 1, %s3088_s15  ;;  %s242_s21 = ssub.s32 %s3092_s16, %s3180_s19 }
   0xd   : > { %p255_p0 = scmp.ne.s32.totalorder %s3088_s15, %s3084_s14  ;;  %p243_p1 = scmp.eq.s32.totalorder %s242_s21, 0 }
   0xe   : > { %p256_p2 = scmp.eq.s32.totalorder %s3176_s17, 1  ;;  %p261_p3 = scmp.ne.s32.totalorder %s3084_s14, %s3080_s13 }
   0xf   : > { %p262_p4 = scmp.eq.s32.totalorder %s2646_s18, 1  ;;  %p2647_p7 = scmp.ge.s32.totalorder %s3092_s16, 1 }
  0x10   : > { %s3191_s22 = scalar_select %p243_p1, %s3088_s15, %s245_s20  }
  0x11   : > { %p3193_p5 = por %p256_p2, %p255_p0  ;;  %p3197_p6 = por %p262_p4, %p261_p3 }
  0x12   : > { %3859 = sst [smem:[#allocation16_spill]] %s3191_s22  ;;  %p295_p8 = scmp.lt.s32.totalorder %s3092_s16, 3 }
  0x13   : > { %p2785_p9 = scmp.eq.s32.totalorder %s3176_s17, 0  ;;  %s3863_s6 = sld [smem:[#allocation19_spill]] }
  0x14   : > { %p3204_p10 = pnand %p2647_p7, %p295_p8  ;;  %s3864_s4 = sld [smem:[#allocation18_spill]] }
  0x15   : > { %s3094_s18 = smov [#allocation5]   ;;  %s3095_s21 = smov 128  }
  0x16   : > { %p2768_p11 = pneg %p3204_p10  ;;  %s325_s20 = sshll.u32 %s3094_s18, 4  ;;  %s326_s20 = int_to_ptr.vmem [resolvable:$true] %s325_s20 }
  0x17   : > { %s3096_s26 = smov 8   ;;  %s3097_s27 = smov [#allocation2]  }
  0x18   : > { %p3218_p12 = pnand %p2785_p9, %p2768_p11  ;;  %s3098_s22 = smov [#allocation7]  }
  0x19   : > { %s323_s28 = sshll.u32 %s3863_s6, 4  ;;  %s308_s6 = sshll.u32 %s3097_s27, 4  ;;  %s324_s28 = int_to_ptr.hbm [resolvable:$true] %s323_s28  ;;  %s309_s6 = int_to_ptr.vmem [resolvable:$true] %s308_s6 }
  0x1a   : > { %s306_s11 = sshll.u32 %s3864_s4, 4  ;;  %s337_s4 = sshll.u32 %s3850_s7, 4  ;;  %s307_s11 = int_to_ptr.hbm [resolvable:$true] %s306_s11  ;;  %s338_s4 = int_to_ptr.hbm [resolvable:$true] %s337_s4 }
  0x1b   : > { %2774 = dma.hbm_to_vmem [thread:$0]  (!%p3218_p12), %s324_s28, 512, %s326_s20, [#allocation6], %s3095_s21, %s3095_s21, %s3096_s26  }
  0x1c   : > { %2771 = dma.hbm_to_vmem [thread:$0]  (!%p3218_p12), %s307_s11, 512, %s309_s6, [#allocation3], %s3095_s21, %s3095_s21, %s3096_s26  }
  0x1d   : > { %s339_s15 = sshll.u32 %s3098_s22, 4  ;;  %394 = sbr.rel (%p3204_p10) target bundleno = 1161 (0x489), region = 56  ;;  %s340_s15 = int_to_ptr.vmem [resolvable:$true] %s339_s15 }
  0x1e   : > { %2777 = dma.hbm_to_vmem [thread:$0]  (!%p3218_p12), %s338_s4, 512, %s340_s15, [#allocation6], %s3095_s21, %s3095_s21, %s3096_s26  }
  0x22   : > { %3063 = dma.done.wait (%p2785_p9), [#allocation3], 512  }
  0x23   : > { %3065 = vsyncadd (%p2785_p9), [#allocation3], 4294966784 }
  0x24   : > { %3067 = dma.done.wait (%p2785_p9), [#allocation6], 1024  }
  0x25   : > { %3069 = vsyncadd (%p2785_p9), [#allocation6], 4294966272  ;;  %s3242_s6 = sshll.u32 %s3176_s17, 3  ;;  %v3099_v0 = vmov 0   ;;  %v618_v17 = vld [vmem:[#allocation2 + $0x18] sm:$0xff]  ;;  %v617_v18 = vld [vmem:[#allocation2 + $0x10] sm:$0xff] }
  0x26   : > { %2832 = vset.pattern.permute.xlu1 %v3099_v0  ;;  %2831 = vset.pattern.permute.xlu0 %v3099_v0  ;;  %p464_p13 = scmp.lt.s32.totalorder %s3242_s6, 15  ;;  %v616_v19 = vld [vmem:[#allocation2 + $0x8] sm:$0xff]  ;;  %v615_v20 = vld [vmem:[#allocation2] sm:$0xff]  ;;  %vm623_vm0 = vcmask 261120   ;;  %vm978_vm1 = vcmask 64512   ;;  %s3757_s25 = sand.u32 1, %s3084_s14  }
  0x27   : > { %2833 = vset.pattern.permute.xlu2 %v3099_v0  ;;  %733 = vmatpush.msra.mxu1 %v618_v17  ;;  %s2453_s26 = scalar_lea.sflag [#allocation4], %s3757_s25 }
  0x28   : > { %s465_s4 = scalar_select %p464_p13, %s3242_s6, 15  ;;  %660 = vmatpush.msra.mxu0 %v618_v17 }
  0x29   : > { %734 = vmatpush.msra.mxu1 %v617_v18 }
  0x2a   : > { %s3246_s15 = sshll.u32 %s465_s4, 3  ;;  %661 = vmatpush.msra.mxu0 %v617_v18 }
  0x2b   : > { %s485_s28 = scalar_lea.vmem %s3846_s3, %s3246_s15  ;;  %s479_s12 = scalar_lea.vmem %s3845_s2, %s3246_s15  ;;  %735 = vmatpush.msra.mxu1 %v616_v19 }
  0x2c   : > { %v560_v1 = vld [vmem:[%s485_s28 + $0x8] sm:$0xff]  ;;  %v559_v2 = vld [vmem:[%s485_s28] sm:$0xff]  ;;  %v561_v3 = vld [vmem:[%s485_s28 + $0x10] sm:$0xff]  ;;  %662 = vmatpush.msra.mxu0 %v616_v19  ;;  %s3260_s21 = scalar_lea.vmem %s3843_s0, %s3246_s15  ;;  %s3270_s29 = scalar_lea.vmem %s3844_s1, %s3246_s15 }
  0x2d   : > { %574 = vperm.xlu1 %2832, %v560_v1   ;;  %569 = vperm.xlu0 %2831, %v559_v2   ;;  %v496_v4 = vld [vmem:[%s479_s12 + $0x8] sm:$0xff]  ;;  %v495_v5 = vld [vmem:[%s479_s12] sm:$0xff]  ;;  %v497_v6 = vld [vmem:[%s479_s12 + $0x10] sm:$0xff]  ;;  %s3010_s15 = scalar_lea.hbm %s3852_s9, 16 }
  0x2e   : > { %579 = vperm.xlu2 %2833, %v561_v3   ;;  %v498_v7 = vld [vmem:[%s479_s12 + $0x18] sm:$0xff]  ;;  %v563_v9 = vld [vmem:[%s485_s28 + $0x20] sm:$0xff]  ;;  %v564_v10 = vld [vmem:[%s485_s28 + $0x28] sm:$0xff]  ;;  %736 = vmatpush.msra.mxu1 %v615_v20 }
  0x2f   : > { %v562_v8 = vld [vmem:[%s485_s28 + $0x18] sm:$0xff]  ;;  %v499_v11 = vld [vmem:[%s479_s12 + $0x20] sm:$0xff]  ;;  %v500_v12 = vld [vmem:[%s479_s12 + $0x28] sm:$0xff]  ;;  %663 = vmatpush.msra.mxu0 %v615_v20 }
  0x30   : > { %v501_v13 = vld [vmem:[%s479_s12 + $0x30] sm:$0xff]  ;;  %v566_v15 = vld [vmem:[%s485_s28 + $0x38] sm:$0xff]  ;;  %v551_v25 = vld [vmem:[%s3270_s29] sm:$0xff] }
  0x31   : > { %v565_v14 = vld [vmem:[%s485_s28 + $0x30] sm:$0xff]  ;;  %v502_v16 = vld [vmem:[%s479_s12 + $0x38] sm:$0xff]  ;;  %v552_v29 = vld [vmem:[%s3270_s29 + $0x8] sm:$0xff]  ;;  %s2656_s28 = sshll.u32 %s3757_s25, 3  ;;  %s2468_s12 = scalar_lea.hbm %s3852_s9, %s3242_s6 }
  0x32   : > { %v489_v22 = vld [vmem:[%s3260_s21 + $0x10] sm:$0xff]  ;;  %v487_v30 = vld [vmem:[%s3260_s21] sm:$0xff]  ;;  %v488_v36 = vld [vmem:[%s3260_s21 + $0x8] sm:$0xff]  ;;  %s455_s18 = scalar_lea.vmem [#allocation8], %s2656_s28 }
  0x33   : > { %v553_v35 = vld [vmem:[%s3270_s29 + $0x10] sm:$0xff]  ;;  %v490_v37 = vld [vmem:[%s3260_s21 + $0x18] sm:$0xff]  ;;  %v555_v47 = vld [vmem:[%s3270_s29 + $0x20] sm:$0xff]  ;;  %s2470_s20 = sshll.u32 %s455_s18, 4  ;;  %s2471_s20 = int_to_ptr.vmem [resolvable:$true] %s2470_s20 }
  0x34   : > { %v554_v43 = vld [vmem:[%s3270_s29 + $0x18] sm:$0xff]  ;;  %v493_v48 = vld [vmem:[%s3260_s21 + $0x30] sm:$0xff]  ;;  %v556_v54 = vld [vmem:[%s3270_s29 + $0x28] sm:$0xff] }
  0x35   : > { %510 = vperm.xlu1 %2832, %v496_v4   ;;  %505 = vperm.xlu0 %2831, %v495_v5   ;;  %v491_v55 = vld [vmem:[%s3260_s21 + $0x20] sm:$0xff]  ;;  %v494_v56 = vld [vmem:[%s3260_s21 + $0x38] sm:$0xff]  ;;  %v492_v62 = vld [vmem:[%s3260_s21 + $0x28] sm:$0xff]  ;;  %s2472_s21 = sshll.u32 %s2468_s12, 4  ;;  %s2473_s21 = int_to_ptr.hbm [resolvable:$true] %s2472_s21 }
  0x36   : > { %515 = vperm.xlu2 %2833, %v497_v6   ;;  %v557_v63 = vld [vmem:[%s3270_s29 + $0x30] sm:$0xff]  ;;  %v558_v2 = vld [vmem:[%s3270_s29 + $0x38] sm:$0xff]  ;;  %v3355_v5 = vld [vmem:[%s3848_s5] ss:$0 sm:$0xff]  ;;  %s3004_s27 = sshra.s32 %s2473_s21, 4  ;;  %s3005_s27 = int_to_ptr.hbm [resolvable:$true] %s3004_s27 }
  0x37   : > { %s3006_s29 = scalar_lea.hbm %s3005_s27, 8  ;;  %p3011_p3 = scmp.lt.s32.totalorder %s3005_s27, %s3852_s9 }
  0x38   : > { %p3007_p0 = scmp.ne.s32.totalorder %s3005_s27, %s3006_s29  ;;  %p3012_p4 = scmp.lt.s32.totalorder %s3010_s15, %s3006_s29 }
  0x3a   : > { %p3008_p1 = pnand %p3007_p0, %p3193_p5  ;;  %p3013_p7 = por %p3012_p4, %p3011_p3 }
  0x3c   : > { %p3009_p2 = pneg %p3008_p1 }
  0x3d   : > { %520 = vperm.xlu1 %2832, %v498_v7   ;;  %584 = vperm.xlu0 %2831, %v562_v8  }
  0x3e   : > { %589 = vperm.xlu2 %2833, %v563_v9   ;;  %p3014_p8 = pnand %p3013_p7, %p3009_p2 }
  0x45   : > { %594 = vperm.xlu1 %2832, %v564_v10   ;;  %525 = vperm.xlu0 %2831, %v499_v11  }
  0x46   : > { %530 = vperm.xlu2 %2833, %v500_v12  }
  0x4d   : > { %535 = vperm.xlu1 %2832, %v501_v13   ;;  %599 = vperm.xlu0 %2831, %v565_v14  }
  0x4e   : > { %604 = vperm.xlu2 %2833, %v566_v15  }
  0x55   : > { %540 = vperm.xlu0 %2831, %v502_v16  }
  0x88   : > { %v580_v21 = vpop.permute.xlu2 %579 }
  0x89   : > { %v3290_v38 = vmul.f32 %v580_v21, %v553_v35 }
  0x90   : > { %v516_v23 = vpop.permute.xlu2 %515 }
  0x91   : > { %v3263_v24 = vmul.f32 %v516_v23, %v489_v22 }
  0x93   : > { %1763 = vmatpush.msrb.mxu0 %v3263_v24 }
  0x98   : > { %v590_v49 = vpop.permute.xlu2 %589 }
  0x99   : > { %v3310_v52 = vmul.f32 %v590_v49, %v555_v47 }
  0x9f   : > { %v575_v26 = vpop.permute.xlu1 %574  ;;  %v570_v27 = vpop.permute.xlu0 %569 }
  0xa0   : > { %v3273_v28 = vmul.f32 %v570_v27, %v551_v25  ;;  %v3279_v31 = vmul.f32 %v575_v26, %v552_v29  ;;  %v531_v61 = vpop.permute.xlu2 %530 }
  0xa1   : > { %v3335_v0 = vmul.f32 %v531_v61, %v492_v62 }
  0xa2   : > { %2674 = vmatmul.msk.f32.vlgmr.msra.gmra.mxu1 %vm623_vm0, %v3273_v28 }
  0xa7   : > { %v511_v32 = vpop.permute.xlu1 %510  ;;  %v506_v33 = vpop.permute.xlu0 %505 }
  0xa8   : > { %v3281_v34 = vmul.f32 %v506_v33, %v487_v30  ;;  %v3292_v41 = vmul.f32 %v511_v32, %v488_v36  ;;  %v605_v3 = vpop.permute.xlu2 %604 }
  0xa9   : > { %v3344_v4 = vmul.f32 %v605_v3, %v558_v2 }
  0xaa   : > { %2666 = vmatmul.msk.f32.vlgmr.msra.gmra.mxu0 %vm623_vm0, %v3281_v34  ;;  %2675 = vmatmul.msk.f32.gmra.mxu1 %vm623_vm0, %v3279_v31 }
  0xaf   : > { %v521_v39 = vpop.permute.xlu1 %520  ;;  %v585_v40 = vpop.permute.xlu0 %584 }
  0xb0   : > { %v3294_v42 = vmul.f32 %v521_v39, %v490_v37  ;;  %v3302_v46 = vmul.f32 %v585_v40, %v554_v43 }
  0xb2   : > { %2667 = vmatmul.msk.f32.gmra.mxu0 %vm623_vm0, %v3292_v41  ;;  %2676 = vmatmul.msk.f32.gmra.mxu1 %vm623_vm0, %v3290_v38 }
  0xb3   : > { %1818 = vmatpush.msrb.mxu1 %v3294_v42 }
  0xb7   : > { %v595_v44 = vpop.permute.xlu1 %594  ;;  %v526_v45 = vpop.permute.xlu0 %525 }
  0xb8   : > { %v3322_v58 = vmul.f32 %v595_v44, %v556_v54  ;;  %v3324_v59 = vmul.f32 %v526_v45, %v491_v55 }
  0xba   : > { %2668 = vmatmul.msk.f32.gmra.mxu0 %vm623_vm0, %v3263_v24  ;;  %2677 = vmatmul.msk.f32.gmra.mxu1 %vm623_vm0, %v3302_v46 }
  0xbf   : > { %v536_v50 = vpop.permute.xlu1 %535  ;;  %v600_v51 = vpop.permute.xlu0 %599 }
  0xc0   : > { %v3312_v53 = vmul.f32 %v536_v50, %v493_v48  ;;  %v3337_v1 = vmul.f32 %v600_v51, %v557_v63 }
  0xc2   : > { %2669 = vmatmul.msk.f32.gmra.mxu0 %vm623_vm0, %v3294_v42  ;;  %2678 = vmatmul.msk.f32.gmra.mxu1 %vm623_vm0, %v3310_v52 }
  0xc3   : > { %1983 = vmatpush.msra.mxu0 %v3312_v53 }
  0xc7   : > { %v541_v57 = vpop.permute.xlu0 %540 }
  0xc8   : > { %v3326_v60 = vmul.f32 %v541_v57, %v494_v56 }
  0xca   : > { %3866 = vst [vmem:[#allocation17_spill] sm:$0xff] %v3326_v60  ;;  %2670 = vmatmul.msk.f32.gmra.mxu0 %vm623_vm0, %v3324_v59  ;;  %2679 = vmatmul.msk.f32.gmra.mxu1 %vm623_vm0, %v3322_v58 }
  0xcb   : > { %2038 = vmatpush.msra.mxu1 %v3326_v60 }
  0xd2   : > { %2671 = vmatmul.msk.f32.gmra.mxu0 %vm623_vm0, %v3335_v0  ;;  %2680 = vmatmul.msk.f32.gmra.mxu1 %vm623_vm0, %v3337_v1 }
  0xda   : > { %2672 = vmatmul.msk.f32.gmra.mxu0 %vm623_vm0, %v3312_v53  ;;  %2681 = vmatmul.msk.f32.gmra.mxu1 %vm623_vm0, %v3344_v4 }
  0xe2   : > { %2673 = vmatmul.msk.f32.gmra.mxu0 %vm623_vm0, %v3326_v60 }
 0x11f   : > { %v738_v6 = vpop.f32.mrf.mxu1 }
 0x120   : > { %v739_v7 = vadd.f32 %v3355_v5, %v738_v6 }
 0x122   : > { %v762_v8 = vmax.f32 %v739_v7, 0.0 }
 0x124   : > { %2682 = vmatpush.xpose.msk.msra.mxu2 %vm623_vm0, %v762_v8 }
 0x127   : > { %v665_v9 = vpop.f32.mrf.mxu0  ;;  %v741_v10 = vpop.f32.mrf.mxu1 }
 0x128   : > { %v666_v11 = vadd.f32 %v3355_v5, %v665_v9  ;;  %v742_v12 = vadd.f32 %v3355_v5, %v741_v10 }
 0x12a   : > { %v689_v13 = vmax.f32 %v666_v11, 0.0  ;;  %v763_v14 = vmax.f32 %v742_v12, 0.0 }
 0x12c   : > { %2683 = vmatmul.msk.f32.vlgmr.msra.gmra.mxu2 %vm623_vm0, %v689_v13  ;;  %2684 = vmatpush.xpose.msk.msra.mxu3 %vm623_vm0, %v763_v14 }
 0x12f   : > { %v668_v15 = vpop.f32.mrf.mxu0  ;;  %v744_v16 = vpop.f32.mrf.mxu1 }
 0x130   : > { %v669_v17 = vadd.f32 %v3355_v5, %v668_v15  ;;  %v745_v18 = vadd.f32 %v3355_v5, %v744_v16 }
 0x132   : > { %v690_v19 = vmax.f32 %v669_v17, 0.0  ;;  %v764_v20 = vmax.f32 %v745_v18, 0.0 }
 0x134   : > { %2685 = vmatmul.msk.f32.vlgmr.msra.gmra.mxu3 %vm623_vm0, %v690_v19  ;;  %2686 = vmatpush.xpose.msk.msrb.mxu2 %vm623_vm0, %v764_v20 }
 0x137   : > { %v671_v21 = vpop.f32.mrf.mxu0  ;;  %v747_v22 = vpop.f32.mrf.mxu1 }
 0x138   : > { %v672_v23 = vadd.f32 %v3355_v5, %v671_v21  ;;  %v748_v25 = vadd.f32 %v3355_v5, %v747_v22 }
 0x13a   : > { %v691_v26 = vmax.f32 %v672_v23, 0.0  ;;  %v765_v27 = vmax.f32 %v748_v25, 0.0 }
 0x13c   : > { %2687 = vmatmul.msk.f32.vlgmr.msrb.gmra.mxu2 %vm623_vm0, %v691_v26  ;;  %2688 = vmatpush.xpose.msk.msrb.mxu3 %vm623_vm0, %v765_v27 }
 0x13f   : > { %v674_v29 = vpop.f32.mrf.mxu0  ;;  %v750_v30 = vpop.f32.mrf.mxu1 }
 0x140   : > { %v675_v32 = vadd.f32 %v3355_v5, %v674_v29  ;;  %v751_v33 = vadd.f32 %v3355_v5, %v750_v30 }
 0x142   : > { %v692_v35 = vmax.f32 %v675_v32, 0.0  ;;  %v766_v36 = vmax.f32 %v751_v33, 0.0 }
 0x144   : > { %2689 = vmatmul.msk.f32.vlgmr.msrb.gmra.mxu3 %vm623_vm0, %v692_v35  ;;  %2690 = vmatpush.xpose.msk.msra.mxu2 %vm623_vm0, %v766_v36 }
 0x147   : > { %v677_v37 = vpop.f32.mrf.mxu0  ;;  %v753_v39 = vpop.f32.mrf.mxu1 }
 0x148   : > { %v678_v40 = vadd.f32 %v3355_v5, %v677_v37  ;;  %v754_v43 = vadd.f32 %v3355_v5, %v753_v39 }
 0x14a   : > { %v693_v44 = vmax.f32 %v678_v40, 0.0  ;;  %v767_v45 = vmax.f32 %v754_v43, 0.0 }
 0x14c   : > { %2691 = vmatmul.msk.f32.vlgmr.msra.gmra.mxu2 %vm623_vm0, %v693_v44  ;;  %2692 = vmatpush.xpose.msk.msra.mxu3 %vm623_vm0, %v767_v45 }
 0x14f   : > { %v680_v47 = vpop.f32.mrf.mxu0  ;;  %v756_v48 = vpop.f32.mrf.mxu1 }
 0x150   : > { %v681_v49 = vadd.f32 %v3355_v5, %v680_v47  ;;  %v757_v50 = vadd.f32 %v3355_v5, %v756_v48 }
 0x152   : > { %v694_v51 = vmax.f32 %v681_v49, 0.0  ;;  %v768_v54 = vmax.f32 %v757_v50, 0.0 }
 0x154   : > { %2693 = vmatmul.msk.f32.vlgmr.msra.gmra.mxu3 %vm623_vm0, %v694_v51  ;;  %2694 = vmatpush.xpose.msk.msrb.mxu2 %vm623_vm0, %v768_v54 }
 0x157   : > { %v683_v55 = vpop.f32.mrf.mxu0  ;;  %v759_v56 = vpop.f32.mrf.mxu1 }
 0x158   : > { %1437 = vmatpush.msra.mxu2 %v3273_v28  ;;  %v684_v57 = vadd.f32 %v3355_v5, %v683_v55  ;;  %v760_v61 = vadd.f32 %v3355_v5, %v759_v56 }
 0x15a   : > { %v695_v62 = vmax.f32 %v684_v57, 0.0  ;;  %v769_v63 = vmax.f32 %v760_v61, 0.0 }
 0x15c   : > { %2695 = vmatmul.msk.f32.vlgmr.msrb.gmra.mxu2 %vm623_vm0, %v695_v62  ;;  %2696 = vmatpush.xpose.msk.msrb.mxu3 %vm623_vm0, %v769_v63 }
 0x15d   : > { %1483 = vmatpush.msrb.mxu2 %v3290_v38 }
 0x15f   : > { %v686_v2 = vpop.f32.mrf.mxu0 }
 0x160   : > { %1460 = vmatpush.msra.mxu3 %v3279_v31  ;;  %v687_v3 = vadd.f32 %v3355_v5, %v686_v2 }
 0x162   : > { %v696_v6 = vmax.f32 %v687_v3, 0.0 }
 0x164   : > { %2697 = vmatmul.msk.f32.vlgmr.msrb.gmra.mxu3 %vm623_vm0, %v696_v6 }
 0x165   : > { %1506 = vmatpush.msrb.mxu3 %v3302_v46 }
 0x1af   : > { %v3393_v7 = vpop.f32.mrf.mxu2 }
 0x1b0   : > { %v979_v8 = vsel %vm978_vm1, %v3393_v7, -inf }
 0x1b1   : > { %980 = vmax.xlane.f32.xlu1 %v979_v8  ;;  %v1171_v32 = vrot.slane %v979_v8, 4 }
 0x1b3   : > { %v1172_v44 = vmax.f32 %v979_v8, %v1171_v32 }
 0x1b5   : > { %v1173_v50 = vrot.slane %v1172_v44, 2 }
 0x1b7   : > { %v3397_v9 = vpop.f32.mrf.mxu3  ;;  %v1174_v6 = vmax.f32 %v1172_v44, %v1173_v50 }
 0x1b8   : > { %v982_v10 = vsel %vm978_vm1, %v3397_v9, -inf }
 0x1b9   : > { %983 = vmax.xlane.f32.xlu2 %v982_v10  ;;  %v1177_v22 = vrot.slane %v982_v10, 4 }
 0x1bb   : > { %v1178_v26 = vmax.f32 %v982_v10, %v1177_v22 }
 0x1bd   : > { %v1179_v30 = vrot.slane %v1178_v26, 2 }
 0x1bf   : > { %v3401_v11 = vpop.f32.mrf.mxu2  ;;  %v1180_v40 = vmax.f32 %v1178_v26, %v1179_v30  ;;  %v1175_v26 = vrot.slane %v1174_v6, 1 }
 0x1c0   : > { %v985_v5 = vsel %vm978_vm1, %v3401_v11, -inf }
 0x1c1   : > { %986 = vmax.xlane.f32.xlu0 %v985_v5  ;;  %v1183_v29 = vrot.slane %v985_v5, 4  ;;  %v1181_v49 = vrot.slane %v1180_v40, 1 }
 0x1c3   : > { %v1184_v33 = vmax.f32 %v985_v5, %v1183_v29  ;;  %v1182_v2 = vmax.f32 %v1180_v40, %v1181_v49 }
 0x1c5   : > { %v1185_v45 = vrot.slane %v1184_v33, 2 }
 0x1c7   : > { %v3405_v12 = vpop.f32.mrf.mxu3  ;;  %v1186_v51 = vmax.f32 %v1184_v33, %v1185_v45 }
 0x1c8   : > { %v988_v13 = vsel %vm978_vm1, %v3405_v12, -inf }
 0x1c9   : > { %989 = vmax.xlane.f32.xlu2 %v988_v13  ;;  %v1189_v36 = vrot.slane %v988_v13, 4  ;;  %v1187_v8 = vrot.slane %v1186_v51, 1 }
 0x1cb   : > { %v1190_v48 = vmax.f32 %v988_v13, %v1189_v36 }
 0x1cd   : > { %v1191_v56 = vrot.slane %v1190_v48, 2 }
 0x1cf   : > { %v3409_v14 = vpop.f32.mrf.mxu2  ;;  %v1192_v13 = vmax.f32 %v1190_v48, %v1191_v56 }
 0x1d0   : > { %v991_v15 = vsel %vm978_vm1, %v3409_v14, -inf }
 0x1d1   : > { %992 = vmax.xlane.f32.xlu1 %v991_v15  ;;  %v1195_v54 = vrot.slane %v991_v15, 4  ;;  %v1193_v32 = vrot.slane %v1192_v13, 1 }
 0x1d3   : > { %v1196_v10 = vmax.f32 %v991_v15, %v1195_v54  ;;  %v1194_v45 = vmax.f32 %v1192_v13, %v1193_v32 }
 0x1d5   : > { %v1197_v29 = vrot.slane %v1196_v10, 2  ;;  %v1222_v56 = vsub.f32 %v3405_v12, %v1194_v45 }
 0x1d7   : > { %v3413_v16 = vpop.f32.mrf.mxu3  ;;  %v1198_v44 = vmax.f32 %v1196_v10, %v1197_v29  ;;  %v1233_v10 = vmul.f32 1.442695, %v1222_v56 }
 0x1d8   : > { %v994_v17 = vsel %vm978_vm1, %v3413_v16, -inf }
 0x1d9   : > { %995 = vmax.xlane.f32.xlu2 %v994_v17  ;;  %v1201_v57 = vrot.slane %v994_v17, 4  ;;  %v1199_v54 = vrot.slane %v1198_v44, 1 }
 0x1db   : > { %v1202_v22 = vmax.f32 %v994_v17, %v1201_v57 }
 0x1dd   : > { %v1203_v33 = vrot.slane %v1202_v22, 2 }
 0x1df   : > { %v3417_v18 = vpop.f32.mrf.mxu2 }
 0x1e0   : > { %v3421_v19 = vsel %vm978_vm1, %v3417_v18, -inf }
 0x1e1   : > { %998 = vmax.xlane.f32.xlu0 %v3421_v19 }
 0x1e7   : > { %v3424_v20 = vpop.f32.mrf.mxu3 }
 0x1e8   : > { %v1000_v21 = vsel %vm978_vm1, %v3424_v20, -inf }
 0x1e9   : > { %1001 = vmax.xlane.f32.xlu1 %v1000_v21  ;;  %v1213_v62 = vrot.slane %v1000_v21, 4 }
 0x224   : > { %v981_v23 = vpop.xlane.xlu1 %980 }
 0x225   : > { %v1003_v25 = vsub.f32 %v3393_v7, %v981_v23  ;;  %v1214_v23 = vmax.f32 %v1000_v21, %v1213_v62 }
 0x227   : > { %v1011_v27 = vmul.f32 1.442695, %v1003_v25  ;;  %v1220_v25 = vsub.f32 %v3397_v9, %v1182_v2  ;;  %v1215_v36 = vrot.slane %v1214_v23, 2 }
 0x229   : > { %2836 = vpow2.f32 %v1011_v27  ;;  %v1188_v27 = vmax.f32 %v1186_v51, %v1187_v8  ;;  %v1229_v40 = vmul.f32 1.442695, %v1220_v25  ;;  %v1216_v49 = vmax.f32 %v1214_v23, %v1215_v36 }
 0x22b   : > { %v1221_v21 = vsub.f32 %v3401_v11, %v1188_v27  ;;  %v1217_v62 = vrot.slane %v1216_v49, 1 }
 0x22c   : > { %v984_v35 = vpop.xlane.xlu2 %983 }
 0x22d   : > { %v1004_v37 = vsub.f32 %v3397_v9, %v984_v35  ;;  %v1207_v35 = vrot.slane %v3421_v19, 4  ;;  %v1231_v51 = vmul.f32 1.442695, %v1221_v21 }
 0x22f   : > { %v3430_v39 = vpop.eup %2836  ;;  %v1013_v43 = vmul.f32 1.442695, %v1004_v37  ;;  %v1208_v48 = vmax.f32 %v3421_v19, %v1207_v35 }
 0x230   : > { %v1027_v47 = vsel %vm978_vm1, %v3430_v39, 0.0 }
 0x231   : > { %2838 = vpow2.f32 %v1013_v43  ;;  %1028 = vadd.xlane.f32.xlu2 %v1027_v47  ;;  %v1176_v43 = vmax.f32 %v1174_v6, %v1175_v26  ;;  %v1204_v47 = vmax.f32 %v1202_v22, %v1203_v33  ;;  %v1209_v57 = vrot.slane %v1208_v48, 2 }
 0x232   : > { %v1200_v6 = vmax.f32 %v1198_v44, %v1199_v54 }
 0x233   : > { %v1219_v50 = vsub.f32 %v3393_v7, %v1176_v43  ;;  %v1210_v13 = vmax.f32 %v1208_v48, %v1209_v57 }
 0x234   : > { %v987_v55 = vpop.xlane.xlu0 %986  ;;  %v1223_v22 = vsub.f32 %v3409_v14, %v1200_v6 }
 0x235   : > { %v1005_v61 = vsub.f32 %v3401_v11, %v987_v55  ;;  %v1205_v11 = vrot.slane %v1204_v47, 1  ;;  %v1227_v19 = vmul.f32 1.442695, %v1219_v50  ;;  %v1211_v27 = vrot.slane %v1210_v13, 1 }
 0x237   : > { %v3435_v63 = vpop.eup %2838  ;;  %v1015_v3 = vmul.f32 1.442695, %v1005_v61 }
 0x238   : > { %v1030_v5 = vsel %vm978_vm1, %v3435_v63, 0.0 }
 0x239   : > { %2840 = vpow2.f32 %v1015_v3  ;;  %1031 = vadd.xlane.f32.xlu0 %v1030_v5  ;;  %v1206_v5 = vmax.f32 %v1204_v47, %v1205_v11 }
 0x23b   : > { %v1224_v26 = vsub.f32 %v3413_v16, %v1206_v5 }
 0x23c   : > { %v990_v30 = vpop.xlane.xlu2 %989 }
 0x23d   : > { %v1006_v15 = vsub.f32 %v3405_v12, %v990_v30  ;;  %v1218_v12 = vmax.f32 %v1216_v49, %v1217_v62 }
 0x23f   : > { %v3442_v37 = vpop.eup %2840  ;;  %v1017_v17 = vmul.f32 1.442695, %v1006_v15  ;;  %v1226_v32 = vsub.f32 %v3424_v20, %v1218_v12  ;;  %v1235_v15 = vmul.f32 1.442695, %v1223_v22 }
 0x240   : > { %v1033_v9 = vsel %vm978_vm1, %v3442_v37, 0.0 }
 0x241   : > { %2842 = vpow2.f32 %v1017_v17  ;;  %1034 = vadd.xlane.f32.xlu1 %v1033_v9  ;;  %v1212_v17 = vmax.f32 %v1210_v13, %v1211_v27  ;;  %v1241_v21 = vmul.f32 1.442695, %v1226_v32 }
 0x242   : > { %2844 = vpow2.f32 %v1229_v40  ;;  %v1237_v40 = vmul.f32 1.442695, %v1224_v26 }
 0x243   : > { %2846 = vpow2.f32 %v1231_v51  ;;  %v1225_v48 = vsub.f32 %v3417_v18, %v1212_v17 }
 0x244   : > { %v993_v55 = vpop.xlane.xlu1 %992 }
 0x245   : > { %v1007_v61 = vsub.f32 %v3409_v14, %v993_v55  ;;  %v1239_v62 = vmul.f32 1.442695, %v1225_v48 }
 0x247   : > { %v3451_v2 = vpop.eup %2842  ;;  %v1019_v3 = vmul.f32 1.442695, %v1007_v61 }
 0x248   : > { %v1036_v8 = vsel %vm978_vm1, %v3451_v2, 0.0  ;;  %v3455_v7 = vpop.eup %2844 }
 0x249   : > { %2848 = vpow2.f32 %v1019_v3  ;;  %1037 = vadd.xlane.f32.xlu2 %v1036_v8  ;;  %v1250_v25 = vsel %vm978_vm1, %v3455_v7, 0.0  ;;  %v3462_v30 = vpop.eup %2846 }
 0x24a   : > { %2850 = vpow2.f32 %v1227_v19  ;;  %v1251_v36 = vrot.slane %v1250_v25, 4 }
 0x24b   : > { %2852 = vpow2.f32 %v1233_v10 }
 0x24c   : > { %v996_v23 = vpop.xlane.xlu2 %995  ;;  %v1252_v45 = vadd.f32 %v1251_v36, %v1250_v25 }
 0x24d   : > { %v1008_v29 = vsub.f32 %v3413_v16, %v996_v23  ;;  %v1257_v16 = vsel %vm978_vm1, %v3462_v30, 0.0 }
 0x24e   : > { %v1258_v47 = vrot.slane %v1257_v16, 4  ;;  %v1253_v11 = vrot.slane %v1252_v45, 2 }
 0x24f   : > { %v3465_v33 = vpop.eup %2848  ;;  %v1021_v35 = vmul.f32 1.442695, %v1008_v29 }
 0x250   : > { %v1039_v14 = vsel %vm978_vm1, %v3465_v33, 0.0  ;;  %v3471_v43 = vpop.eup %2850  ;;  %v1259_v57 = vadd.f32 %v1258_v47, %v1257_v16  ;;  %v1254_v10 = vadd.f32 %v1253_v11, %v1252_v45 }
 0x251   : > { %2854 = vpow2.f32 %v1021_v35  ;;  %1040 = vadd.xlane.f32.xlu0 %v1039_v14  ;;  %v3473_v44 = vpop.eup %2852  ;;  %v1243_v50 = vsel %vm978_vm1, %v3471_v43, 0.0 }
 0x252   : > { %2856 = vpow2.f32 %v1235_v15  ;;  %v1264_v51 = vsel %vm978_vm1, %v3473_v44, 0.0  ;;  %v1244_v61 = vrot.slane %v1243_v50, 4  ;;  %v1260_v5 = vrot.slane %v1259_v57, 2 }
 0x253   : > { %2858 = vpow2.f32 %v1237_v40  ;;  %v1255_v14 = vrot.slane %v1254_v10, 1 }
 0x254   : > { %v999_v9 = vpop.xlane.xlu0 %998  ;;  %2860 = vpow2.f32 %v1241_v21  ;;  %v1245_v13 = vadd.f32 %v1244_v61, %v1243_v50  ;;  %v1261_v35 = vadd.f32 %v1260_v5, %v1259_v57 }
 0x255   : > { %v1009_v49 = vsub.f32 %v3417_v18, %v999_v9  ;;  %v1265_v18 = vrot.slane %v1264_v51, 4  ;;  %v3504_v47 = vadd.f32 %v1255_v14, %v1254_v10 }
 0x256   : > { %v1246_v15 = vrot.slane %v1245_v13, 2  ;;  %v1262_v21 = vrot.slane %v1261_v35, 1 }
 0x257   : > { %v3481_v54 = vpop.eup %2854  ;;  %v1023_v55 = vmul.f32 1.442695, %v1009_v49  ;;  %v1266_v22 = vadd.f32 %v1265_v18, %v1264_v51  ;;  %vm1319_vm3 = vweird.f32 %v3504_v47 }
 0x258   : > { %v1042_v56 = vsel %vm978_vm1, %v3481_v54, 0.0  ;;  %v3485_v3 = vpop.eup %2856  ;;  %v1247_v9 = vadd.f32 %v1246_v15, %v1245_v13  ;;  %v3512_v11 = vadd.f32 %v1262_v21, %v1261_v35 }
 0x259   : > { %2862 = vpow2.f32 %v1023_v55  ;;  %1043 = vadd.xlane.f32.xlu1 %v1042_v56  ;;  %v3487_v19 = vpop.eup %2858  ;;  %v1271_v23 = vsel %vm978_vm1, %v3485_v3, 0.0  ;;  %v1267_v36 = vrot.slane %v1266_v22, 2 }
 0x25a   : > { %v3489_v6 = vpop.eup %2860  ;;  %2864 = vpow2.f32 %v1239_v62  ;;  %v1278_v25 = vsel %vm978_vm1, %v3487_v19, 0.0  ;;  %v1248_v57 = vrot.slane %v1247_v9, 1  ;;  %vm1334_vm6 = vweird.f32 %v3512_v11 }
 0x25b   : > { %v1292_v29 = vsel %vm978_vm1, %v3489_v6, 0.0  ;;  %v1279_v40 = vrot.slane %v1278_v25, 4  ;;  %v1268_v48 = vadd.f32 %v1267_v36, %v1266_v22 }
 0x25c   : > { %v1002_v8 = vpop.xlane.xlu1 %1001  ;;  %v1293_v17 = vrot.slane %v1292_v29, 4  ;;  %v3516_v5 = vadd.f32 %v1248_v57, %v1247_v9 }
 0x25d   : > { %v1010_v12 = vsub.f32 %v3424_v20, %v1002_v8  ;;  %v1272_v20 = vrot.slane %v1271_v23, 4  ;;  %v1280_v49 = vadd.f32 %v1279_v40, %v1278_v25  ;;  %v1269_v62 = vrot.slane %v1268_v48, 1 }
 0x25e   : > { %v1294_v50 = vadd.f32 %v1293_v17, %v1292_v29  ;;  %vm1304_vm9 = vweird.f32 %v3516_v5 }
 0x25f   : > { %v3496_v26 = vpop.eup %2862  ;;  %v1025_v27 = vmul.f32 1.442695, %v1010_v12  ;;  %v1273_v45 = vadd.f32 %v1272_v20, %v1271_v23  ;;  %v1281_v18 = vrot.slane %v1280_v49, 2  ;;  %v3518_v12 = vadd.f32 %v1269_v62, %v1268_v48 }
 0x260   : > { %v1045_v32 = vsel %vm978_vm1, %v3496_v26, 0.0  ;;  %v3502_v16 = vpop.eup %2864  ;;  %v1295_v10 = vrot.slane %v1294_v50, 2 }
 0x261   : > { %2866 = vpow2.f32 %v1025_v27  ;;  %1046 = vadd.xlane.f32.xlu2 %v1045_v32  ;;  %v1285_v51 = vsel %vm978_vm1, %v3502_v16, 0.0  ;;  %v1274_v61 = vrot.slane %v1273_v45, 2  ;;  %v1282_v22 = vadd.f32 %v1281_v18, %v1280_v49 }
 0x262   : > { %2868 = vrcp.f32 %v3504_v47  ;;  %v1286_v8 = vrot.slane %v1285_v51, 4  ;;  %v1296_v25 = vadd.f32 %v1295_v10, %v1294_v50  ;;  %v1355_v60 = vand.u32 2147483648, %v3518_v12 }
 0x263   : > { %2870 = vrcp.f32 %v3512_v11  ;;  %v1275_v13 = vadd.f32 %v1274_v61, %v1273_v45  ;;  %v1283_v32 = vrot.slane %v1282_v22, 1  ;;  %vm1349_vm13 = vweird.f32 %v3518_v12 }
 0x264   : > { %v1287_v23 = vadd.f32 %v1286_v8, %v1285_v51  ;;  %2872 = vrcp.f32 %v3516_v5  ;;  %v1297_v14 = vrot.slane %v1296_v25, 1 }
 0x265   : > { %v1276_v29 = vrot.slane %v1275_v13, 1  ;;  %2874 = vrcp.f32 %v3518_v12  ;;  %v3529_v17 = vadd.f32 %v1283_v32, %v1282_v22  ;;  %v1323_v32 = vand.u32 2147483647, %v3504_v47 }
 0x266   : > { %v1288_v35 = vrot.slane %v1287_v23, 2  ;;  %v3533_v48 = vadd.f32 %v1297_v14, %v1296_v25  ;;  %v1325_v25 = vand.u32 2147483648, %v3504_v47 }
 0x267   : > { %v3508_v55 = vpop.eup %2866  ;;  %v3525_v36 = vadd.f32 %v1276_v29, %v1275_v13  ;;  %vm1324_vm7 = vcmp.eq.f32.partialorder %v1323_v32, 8.507059e+37 }
 0x268   : > { %v1048_v56 = vsel %vm978_vm1, %v3508_v55, 0.0  ;;  %v2869_v27 = vpop.eup %2868  ;;  %v1289_v21 = vadd.f32 %v1288_v35, %v1287_v23 }
 0x269   : > { %1049 = vadd.xlane.f32.xlu0 %v1048_v56  ;;  %v3522_v15 = vpop.eup %2870  ;;  %v1315_v20 = vmul.f32 %v2869_v27, %v3504_v47  ;;  %2876 = vrcp.f32 %v3525_v36  ;;  %vm1320_vm2 = vweird.f32 %v2869_v27 }
 0x26a   : > { %v1330_v40 = vmul.f32 %v3522_v15, %v3512_v11  ;;  %v3531_v9 = vpop.eup %2872  ;;  %2878 = vrcp.f32 %v3529_v17  ;;  %v1290_v56 = vrot.slane %v1289_v21, 1  ;;  %vm3556_vm4 = vmor %vm1319_vm3, %vm1320_vm2  ;;  %vm1335_vm5 = vweird.f32 %v3522_v15 }
 0x26b   : > { %v1316_v45 = vsub.f32 1.0, %v1315_v20  ;;  %v3535_v49 = vpop.eup %2874  ;;  %v1300_v51 = vmul.f32 %v3531_v9, %v3516_v5  ;;  %2880 = vrcp.f32 %v3533_v48  ;;  %vm3575_vm8 = vmor %vm1334_vm6, %vm1335_vm5  ;;  %vm1305_vm10 = vweird.f32 %v3531_v9 }
 0x26c   : > { %v1331_v50 = vsub.f32 1.0, %v1330_v40  ;;  %v1345_v61 = vmul.f32 %v3535_v49, %v3518_v12  ;;  %v3545_v8 = vadd.f32 %v1290_v56, %v1289_v21  ;;  %vm1350_vm11 = vweird.f32 %v3535_v49  ;;  %vm3598_vm14 = vmor %vm1304_vm9, %vm1305_vm10 }
 0x26d   : > { %v1317_v57 = vmul.f32 %v2869_v27, %v1316_v45  ;;  %v1301_v18 = vsub.f32 1.0, %v1300_v51  ;;  %v1340_v51 = vand.u32 2147483648, %v3512_v11  ;;  %vm1351_vm15 = vmor %vm1349_vm13, %vm1350_vm11  ;;  %vm1379_vm9 = vweird.f32 %v3529_v17 }
 0x26e   : > { %v1332_v62 = vmul.f32 %v3522_v15, %v1331_v50  ;;  %v1346_v22 = vsub.f32 1.0, %v1345_v61  ;;  %2882 = vrcp.f32 %v3545_v8  ;;  %v1326_v50 = vor.u32 1.1754944e-38, %v1325_v25 }
 0x26f   : > { %v3547_v10 = vpop.eup %2876  ;;  %v1318_v13 = vadd.f32 %v2869_v27, %v1317_v57  ;;  %v1302_v14 = vmul.f32 %v3531_v9, %v1301_v18  ;;  %v1310_v61 = vand.u32 2147483648, %v3516_v5  ;;  %v1341_v35 = vor.u32 1.1754944e-38, %v1340_v51 }
 0x270   : > { %v3549_v23 = vpop.eup %2878  ;;  %v1333_v20 = vadd.f32 %v3522_v15, %v1332_v62  ;;  %v1347_v21 = vmul.f32 %v3535_v49, %v1346_v22  ;;  %v1360_v47 = vmul.f32 %v3547_v10, %v3525_v36  ;;  %vm1365_vm5 = vweird.f32 %v3547_v10 }
 0x271   : > { %v3552_v29 = vpop.eup %2880  ;;  %v1322_v40 = vsel %vm3556_vm4, %v2869_v27, %v1318_v13  ;;  %v1375_v45 = vmul.f32 %v3549_v23, %v3529_v17  ;;  %v1338_v27 = vand.u32 2147483647, %v3512_v11  ;;  %v1303_v13 = vadd.f32 %v3531_v9, %v1302_v14 }
 0x272   : > { %v1405_v56 = vmul.f32 %v3552_v29, %v3533_v48  ;;  %v1327_v62 = vsel %vm1324_vm7, %v1326_v50, %v1322_v40  ;;  %v1337_v18 = vsel %vm3575_vm8, %v3522_v15, %v1333_v20  ;;  %v1348_v22 = vadd.f32 %v3535_v49, %v1347_v21 }
 0x273   : > { %v1361_v25 = vsub.f32 1.0, %v1360_v47  ;;  %v1376_v32 = vsub.f32 1.0, %v1375_v45  ;;  %v1308_v40 = vand.u32 2147483647, %v3516_v5  ;;  %v1328_v15 = vmul.f32 %v3455_v7, %v1327_v62 }
 0x274   : > { %v3589_v11 = vpop.eup %2882  ;;  %v1406_v50 = vsub.f32 1.0, %v1405_v56  ;;  %vm1339_vm12 = vcmp.eq.f32.partialorder %v1338_v27, 8.507059e+37  ;;  %v1353_v20 = vand.u32 2147483647, %v3518_v12  ;;  %v1307_v47 = vsel %vm3598_vm14, %v3531_v9, %v1303_v13 }
 0x275   : > { %v1342_v21 = vsel %vm1339_vm12, %v1341_v35, %v1337_v18  ;;  %v1311_v45 = vor.u32 1.1754944e-38, %v1310_v61  ;;  %v1352_v7 = vsel %vm1351_vm15, %v3535_v49, %v1348_v22  ;;  %v1362_v51 = vmul.f32 %v3547_v10, %v1361_v25 }
 0x276   : > { %v1377_v12 = vmul.f32 %v3549_v23, %v1376_v32  ;;  %v1390_v5 = vmul.f32 %v3589_v11, %v3545_v8  ;;  %v1356_v56 = vor.u32 1.1754944e-38, %v1355_v60  ;;  %vm1309_vm2 = vcmp.eq.f32.partialorder %v1308_v40, 8.507059e+37 }
 0x277   : > { %v1407_v57 = vmul.f32 %v3552_v29, %v1406_v50  ;;  %v1343_v27 = vmul.f32 %v3462_v30, %v1342_v21  ;;  %vm1354_vm3 = vcmp.eq.f32.partialorder %v1353_v20, 8.507059e+37  ;;  %v1312_v62 = vsel %vm1309_vm2, %v1311_v45, %v1307_v47 }
 0x278   : > { %v1357_v9 = vsel %vm1354_vm3, %v1356_v56, %v1352_v7  ;;  %vm1364_vm4 = vweird.f32 %v3525_v36  ;;  %v1368_v49 = vand.u32 2147483647, %v3525_v36  ;;  %v1363_v61 = vadd.f32 %v3547_v10, %v1362_v51 }
 0x279   : > { %v1378_v18 = vadd.f32 %v3549_v23, %v1377_v12  ;;  %vm1380_vm6 = vweird.f32 %v3549_v23  ;;  %v1391_v60 = vsub.f32 1.0, %v1390_v5  ;;  %v1370_v13 = vand.u32 2147483648, %v3525_v36  ;;  %vm3623_vm8 = vmor %vm1364_vm4, %vm1365_vm5 }
 0x27a   : > { %v1385_v30 = vand.u32 2147483648, %v3529_v17  ;;  %v1408_v22 = vadd.f32 %v3552_v29, %v1407_v57  ;;  %vm1410_vm7 = vweird.f32 %v3552_v29  ;;  %v1358_v25 = vmul.f32 %v3473_v44, %v1357_v9  ;;  %vm3631_vm10 = vmor %vm1379_vm9, %vm1380_vm6 }
 0x27b   : > { %v1383_v35 = vand.u32 2147483647, %v3529_v17  ;;  %v1415_v40 = vand.u32 2147483648, %v3533_v48  ;;  %v1313_v36 = vmul.f32 %v3471_v43, %v1312_v62  ;;  %vm1409_vm11 = vweird.f32 %v3533_v48 }
 0x27c   : > { %v1413_v44 = vand.u32 2147483647, %v3533_v48  ;;  %v1382_v17 = vsel %vm3631_vm10, %v3549_v23, %v1378_v18  ;;  %vm1411_vm12 = vmor %vm1409_vm11, %vm1410_vm7  ;;  %v1392_v43 = vmul.f32 %v3589_v11, %v1391_v60  ;;  %v1371_v20 = vor.u32 1.1754944e-38, %v1370_v13 }
 0x27d   : > { %v1386_v14 = vor.u32 1.1754944e-38, %v1385_v30  ;;  %v1412_v21 = vsel %vm1411_vm12, %v3552_v29, %v1408_v22  ;;  %vm1369_vm13 = vcmp.eq.f32.partialorder %v1368_v49, 8.507059e+37  ;;  %vm1384_vm14 = vcmp.eq.f32.partialorder %v1383_v35, 8.507059e+37 }
 0x27e   : > { %v1416_v48 = vor.u32 1.1754944e-38, %v1415_v40  ;;  %vm1414_vm15 = vcmp.eq.f32.partialorder %v1413_v44, 8.507059e+37  ;;  %vm1395_vm2 = vweird.f32 %v3589_v11  ;;  %v1400_v23 = vand.u32 2147483648, %v3545_v8 }
 0x27f   : > { %v1387_v45 = vsel %vm1384_vm14, %v1386_v14, %v1382_v17  ;;  %vm1394_vm3 = vweird.f32 %v3545_v8  ;;  %v1398_v29 = vand.u32 2147483647, %v3545_v8 }
 0x280   : > { %v1417_v7 = vsel %vm1414_vm15, %v1416_v48, %v1412_v21  ;;  %v1388_v12 = vmul.f32 %v3487_v19, %v1387_v45  ;;  %vm1396_vm4 = vmor %vm1394_vm3, %vm1395_vm2  ;;  %v1401_v57 = vor.u32 1.1754944e-38, %v1400_v23 }
 0x281   : > { %v1418_v5 = vmul.f32 %v3489_v6, %v1417_v7  ;;  %vm1399_vm5 = vcmp.eq.f32.partialorder %v1398_v29, 8.507059e+37 }
 0x28a   : > { %1658 = vxpose.xlu2.b32.start.end [1/1] (short) (narrow) %v1328_v15, 8  ;;  %v1367_v15 = vsel %vm3623_vm8, %v3547_v10, %v1363_v61  ;;  %v1393_v10 = vadd.f32 %v3589_v11, %v1392_v43 }
 0x28b   : > { %v1372_v47 = vsel %vm1369_vm13, %v1371_v20, %v1367_v15 }
 0x28c   : > { %v1373_v51 = vmul.f32 %v3485_v3, %v1372_v47  ;;  %v1397_v56 = vsel %vm1396_vm4, %v3589_v11, %v1393_v10 }
 0x292   : > { %1713 = vxpose.xlu0.b32.start.end [1/1] (short) (narrow) %v1343_v27, 8  ;;  %1768 = vxpose.xlu2.b32.start.end [1/1] (short) (narrow) %v1358_v25, 8  ;;  %v1402_v27 = vsel %vm1399_vm5, %v1401_v57, %v1397_v56 }
 0x293   : > { %1603 = vxpose.xlu1.b32.start.end [1/1] (short) (narrow) %v1313_v36, 8  ;;  %v1403_v62 = vmul.f32 %v3502_v16, %v1402_v27 }
 0x29a   : > { %1823 = vxpose.xlu0.b32.start.end [1/1] (short) (narrow) %v1373_v51, 8  ;;  %1878 = vxpose.xlu2.b32.start.end [1/1] (short) (narrow) %v1388_v12, 8 }
 0x29b   : > { %1988 = vxpose.xlu1.b32.start.end [1/1] (short) (narrow) %v1418_v5, 8 }
 0x2a2   : > { %1933 = vxpose.xlu0.b32.start.end [1/1] (short) (narrow) %v1403_v62, 8 }
 0x2a4   : > { %v1029_v3 = vpop.xlane.xlu2 %1028 }
 0x2a5   : > { %2884 = vrcp.f32 %v1029_v3  ;;  %v1062_v6 = vand.u32 2147483648, %v1029_v3  ;;  %v1060_v18 = vand.u32 2147483647, %v1029_v3  ;;  %vm1056_vm7 = vweird.f32 %v1029_v3 }
 0x2a7   : > { %v1063_v13 = vor.u32 1.1754944e-38, %v1062_v6  ;;  %vm1061_vm9 = vcmp.eq.f32.partialorder %v1060_v18, 8.507059e+37 }
 0x2ab   : > { %v2885_v19 = vpop.eup %2884 }
 0x2ac   : > { %v1052_v9 = vmul.f32 %v2885_v19, %v1029_v3  ;;  %v1032_v49 = vpop.xlane.xlu0 %1031  ;;  %vm1057_vm6 = vweird.f32 %v2885_v19 }
 0x2ad   : > { %2886 = vrcp.f32 %v1032_v49  ;;  %vm1058_vm8 = vmor %vm1056_vm7, %vm1057_vm6  ;;  %v1077_v40 = vand.u32 2147483648, %v1032_v49  ;;  %v1075_v50 = vand.u32 2147483647, %v1032_v49  ;;  %vm1071_vm11 = vweird.f32 %v1032_v49 }
 0x2ae   : > { %v1053_v8 = vsub.f32 1.0, %v1052_v9 }
 0x2af   : > { %v1078_v17 = vor.u32 1.1754944e-38, %v1077_v40  ;;  %vm1076_vm13 = vcmp.eq.f32.partialorder %v1075_v50, 8.507059e+37 }
 0x2b0   : > { %v1054_v61 = vmul.f32 %v2885_v19, %v1053_v8 }
 0x2b2   : > { %v1055_v60 = vadd.f32 %v2885_v19, %v1054_v61 }
 0x2b3   : > { %v2887_v11 = vpop.eup %2886 }
 0x2b4   : > { %v1059_v30 = vsel %vm1058_vm8, %v2885_v19, %v1055_v60  ;;  %v1067_v16 = vmul.f32 %v2887_v11, %v1032_v49  ;;  %v1035_v22 = vpop.xlane.xlu1 %1034  ;;  %vm1072_vm10 = vweird.f32 %v2887_v11 }
 0x2b5   : > { %v1064_v25 = vsel %vm1061_vm9, %v1063_v13, %v1059_v30  ;;  %2888 = vrcp.f32 %v1035_v22  ;;  %vm1073_vm12 = vmor %vm1071_vm11, %vm1072_vm10  ;;  %v1092_v47 = vand.u32 2147483648, %v1035_v22  ;;  %v1090_v7 = vand.u32 2147483647, %v1035_v22 }
 0x2b6   : > { %v1068_v32 = vsub.f32 1.0, %v1067_v16  ;;  %v1065_v35 = vmul.f32 %v3430_v39, %v1064_v25  ;;  %vm1086_vm15 = vweird.f32 %v1035_v22 }
 0x2b7   : > { %v1093_v51 = vor.u32 1.1754944e-38, %v1092_v47  ;;  %vm1091_vm3 = vcmp.eq.f32.partialorder %v1090_v7, 8.507059e+37 }
 0x2b8   : > { %v1069_v36 = vmul.f32 %v2887_v11, %v1068_v32  ;;  %2698 = vmatmul.msk.f32.vlgmr.msra.gmra.mxu2 %vm978_vm1, %v1065_v35 }
 0x2b9   : > { %1529 = vmatpush.msra.mxu2 %v3310_v52 }
 0x2ba   : > { %v1070_v44 = vadd.f32 %v2887_v11, %v1069_v36 }
 0x2bb   : > { %v2889_v15 = vpop.eup %2888 }
 0x2bc   : > { %v1074_v43 = vsel %vm1073_vm12, %v2887_v11, %v1070_v44  ;;  %v1082_v20 = vmul.f32 %v2889_v15, %v1035_v22  ;;  %v1038_v14 = vpop.xlane.xlu2 %1037  ;;  %vm1087_vm14 = vweird.f32 %v2889_v15 }
 0x2bd   : > { %v1079_v21 = vsel %vm1076_vm13, %v1078_v17, %v1074_v43  ;;  %2890 = vrcp.f32 %v1038_v14  ;;  %vm1088_vm2 = vmor %vm1086_vm15, %vm1087_vm14  ;;  %v1107_v27 = vand.u32 2147483648, %v1038_v14  ;;  %v1105_v3 = vand.u32 2147483647, %v1038_v14 }
 0x2be   : > { %v1083_v39 = vsub.f32 1.0, %v1082_v20  ;;  %v1080_v48 = vmul.f32 %v3435_v63, %v1079_v21  ;;  %vm1101_vm5 = vweird.f32 %v1038_v14 }
 0x2bf   : > { %v1108_v49 = vor.u32 1.1754944e-38, %v1107_v27  ;;  %vm1106_vm7 = vcmp.eq.f32.partialorder %v1105_v3, 8.507059e+37 }
 0x2c0   : > { %v1084_v45 = vmul.f32 %v2889_v15, %v1083_v39  ;;  %2699 = vmatmul.msk.f32.vlgmr.msra.gmra.mxu3 %vm978_vm1, %v1080_v48 }
 0x2c1   : > { %1552 = vmatpush.msra.mxu3 %v3322_v58 }
 0x2c2   : > { %v1085_v10 = vadd.f32 %v2889_v15, %v1084_v45 }
 0x2c3   : > { %v2891_v23 = vpop.eup %2890 }
 0x2c4   : > { %v1089_v12 = vsel %vm1088_vm2, %v2889_v15, %v1085_v10  ;;  %v1097_v29 = vmul.f32 %v2891_v23, %v1038_v14  ;;  %v1041_v5 = vpop.xlane.xlu0 %1040  ;;  %vm1102_vm4 = vweird.f32 %v2891_v23 }
 0x2c5   : > { %v1094_v56 = vsel %vm1091_vm3, %v1093_v51, %v1089_v12  ;;  %2892 = vrcp.f32 %v1041_v5  ;;  %vm1103_vm6 = vmor %vm1101_vm5, %vm1102_vm4  ;;  %v1122_v11 = vand.u32 2147483648, %v1041_v5  ;;  %v1120_v30 = vand.u32 2147483647, %v1041_v5 }
 0x2c6   : > { %v1098_v63 = vsub.f32 1.0, %v1097_v29  ;;  %v1095_v57 = vmul.f32 %v3442_v37, %v1094_v56  ;;  %vm1116_vm9 = vweird.f32 %v1041_v5 }
 0x2c7   : > { %v1123_v25 = vor.u32 1.1754944e-38, %v1122_v11  ;;  %vm1121_vm11 = vcmp.eq.f32.partialorder %v1120_v30, 8.507059e+37  ;;  %v2050_v30 = vld [vmem:[#allocation7 + $0x18] sm:$0xff] }
 0x2c8   : > { %v1099_v62 = vmul.f32 %v2891_v23, %v1098_v63  ;;  %2700 = vmatmul.msk.f32.vlgmr.msrb.gmra.mxu2 %vm978_vm1, %v1095_v57 }
 0x2c9   : > { %1575 = vmatpush.msrb.mxu2 %v3337_v1 }
 0x2ca   : > { %v1100_v19 = vadd.f32 %v2891_v23, %v1099_v62 }
 0x2cb   : > { %v2893_v9 = vpop.eup %2892 }
 0x2cc   : > { %v1104_v8 = vsel %vm1103_vm6, %v2891_v23, %v1100_v19  ;;  %v1112_v6 = vmul.f32 %v2893_v9, %v1041_v5  ;;  %v1044_v61 = vpop.xlane.xlu1 %1043  ;;  %vm1117_vm8 = vweird.f32 %v2893_v9 }
 0x2cd   : > { %v1109_v18 = vsel %vm1106_vm7, %v1108_v49, %v1104_v8  ;;  %2894 = vrcp.f32 %v1044_v61  ;;  %vm1118_vm10 = vmor %vm1116_vm9, %vm1117_vm8  ;;  %v1137_v44 = vand.u32 2147483648, %v1044_v61  ;;  %v1135_v17 = vand.u32 2147483647, %v1044_v61 }
 0x2ce   : > { %v1113_v37 = vsub.f32 1.0, %v1112_v6  ;;  %v1110_v60 = vmul.f32 %v3451_v2, %v1109_v18  ;;  %vm1131_vm13 = vweird.f32 %v1044_v61  ;;  %v2045_v18 = vld [vmem:[#allocation5 + $0x10] sm:$0xff] }
 0x2cf   : > { %v1138_v14 = vor.u32 1.1754944e-38, %v1137_v44  ;;  %vm1136_vm15 = vcmp.eq.f32.partialorder %v1135_v17, 8.507059e+37 }
 0x2d0   : > { %v1114_v13 = vmul.f32 %v2893_v9, %v1113_v37  ;;  %2701 = vmatmul.msk.f32.vlgmr.msrb.gmra.mxu3 %vm978_vm1, %v1110_v60  ;;  %v2044_v37 = vld [vmem:[#allocation5 + $0x8] sm:$0xff]  ;;  %v2043_v60 = vld [vmem:[#allocation5] sm:$0xff] }
 0x2d1   : > { %1598 = vmatpush.msrb.mxu3 %v3344_v4 }
 0x2d2   : > { %v1115_v16 = vadd.f32 %v2893_v9, %v1114_v13 }
 0x2d3   : > { %v2895_v22 = vpop.eup %2894 }
 0x2d4   : > { %v1119_v32 = vsel %vm1118_vm10, %v2893_v9, %v1115_v16  ;;  %v1127_v35 = vmul.f32 %v2895_v22, %v1044_v61  ;;  %v1047_v40 = vpop.xlane.xlu2 %1046  ;;  %vm1132_vm12 = vweird.f32 %v2895_v22  ;;  %vm2365_vm10 = vcmask 1042434  }
 0x2d5   : > { %v1124_v36 = vsel %vm1121_vm11, %v1123_v25, %v1119_v32  ;;  %2896 = vrcp.f32 %v1047_v40  ;;  %vm1133_vm14 = vmor %vm1131_vm13, %vm1132_vm12  ;;  %v1152_v7 = vand.u32 2147483648, %v1047_v40  ;;  %v1150_v23 = vand.u32 2147483647, %v1047_v40  ;;  %v2048_v25 = vld [vmem:[#allocation7 + $0x8] sm:$0xff]  ;;  %v2047_v32 = vld [vmem:[#allocation7] sm:$0xff] }
 0x2d6   : > { %v1128_v2 = vsub.f32 1.0, %v1127_v35  ;;  %v1125_v50 = vmul.f32 %v3465_v33, %v1124_v36  ;;  %vm1146_vm3 = vweird.f32 %v1047_v40  ;;  %vm2367_vm11 = vcmask 1043459  }
 0x2d7   : > { %v1153_v29 = vor.u32 1.1754944e-38, %v1152_v7  ;;  %vm1151_vm5 = vcmp.eq.f32.partialorder %v1150_v23, 8.507059e+37  ;;  %v3736_v7 = vld [vmem:[%s3851_s8] ss:$0 sm:$0xff]  ;;  %vm2369_vm12 = vcmask 1044484   ;;  %vm2371_vm13 = vcmask 1045509  }
 0x2d8   : > { %v1129_v15 = vmul.f32 %v2895_v22, %v1128_v2  ;;  %2702 = vmatmul.msk.f32.vlgmr.msra.gmra.mxu2 %vm978_vm1, %v1125_v50 }
 0x2d9   : > { %1653 = vmatpush.msra.mxu2 %v3281_v34 }
 0x2da   : > { %v1130_v43 = vadd.f32 %v2895_v22, %v1129_v15 }
 0x2db   : > { %v2897_v20 = vpop.eup %2896 }
 0x2dc   : > { %v1134_v21 = vsel %vm1133_vm14, %v2895_v22, %v1130_v43  ;;  %v1142_v39 = vmul.f32 %v2897_v20, %v1047_v40  ;;  %v1050_v48 = vpop.xlane.xlu0 %1049  ;;  %vm1147_vm2 = vweird.f32 %v2897_v20  ;;  %v2049_v22 = vld [vmem:[#allocation7 + $0x10] sm:$0xff]  ;;  %vm2373_vm14 = vcmask 1046534  }
 0x2dd   : > { %v1139_v47 = vsel %vm1136_vm15, %v1138_v14, %v1134_v21  ;;  %2898 = vrcp.f32 %v1050_v48  ;;  %vm1148_vm4 = vmor %vm1146_vm3, %vm1147_vm2  ;;  %v1167_v27 = vand.u32 2147483648, %v1050_v48  ;;  %v1165_v3 = vand.u32 2147483647, %v1050_v48 }
 0x2de   : > { %v1143_v33 = vsub.f32 1.0, %v1142_v39  ;;  %v1140_v45 = vmul.f32 %v3481_v54, %v1139_v47  ;;  %vm1161_vm7 = vweird.f32 %v1050_v48  ;;  %vm2375_vm15 = vcmask 1047559  }
 0x2df   : > { %v1168_v9 = vor.u32 1.1754944e-38, %v1167_v27  ;;  %vm1166_vm9 = vcmp.eq.f32.partialorder %v1165_v3, 8.507059e+37 }
 0x2e0   : > { %v1144_v10 = vmul.f32 %v2897_v20, %v1143_v33  ;;  %2703 = vmatmul.msk.f32.vlgmr.msra.gmra.mxu3 %vm978_vm1, %v1140_v45 }
 0x2e1   : > { %1708 = vmatpush.msra.mxu3 %v3292_v41 }
 0x2e2   : > { %v1145_v51 = vadd.f32 %v2897_v20, %v1144_v10 }
 0x2e3   : > { %v2899_v12 = vpop.eup %2898 }
 0x2e4   : > { %v1149_v5 = vsel %vm1148_vm4, %v2897_v20, %v1145_v51  ;;  %v1157_v56 = vmul.f32 %v2899_v12, %v1050_v48  ;;  %vm1162_vm6 = vweird.f32 %v2899_v12 }
 0x2e5   : > { %v1154_v63 = vsel %vm1151_vm5, %v1153_v29, %v1149_v5  ;;  %vm1163_vm8 = vmor %vm1161_vm7, %vm1162_vm6 }
 0x2e6   : > { %v1158_v57 = vsub.f32 1.0, %v1157_v56  ;;  %v1155_v54 = vmul.f32 %v3496_v26, %v1154_v63  ;;  %v2046_v26 = vld [vmem:[#allocation5 + $0x18] sm:$0xff] }
 0x2e8   : > { %v1159_v62 = vmul.f32 %v2899_v12, %v1158_v57  ;;  %2704 = vmatmul.msk.f32.vlgmr.msrb.gmra.mxu2 %vm978_vm1, %v1155_v54 }
 0x2e9   : > { %1873 = vmatpush.msrb.mxu2 %v3324_v59 }
 0x2ea   : > { %v1160_v19 = vadd.f32 %v2899_v12, %v1159_v62 }
 0x2ec   : > { %v1164_v49 = vsel %vm1163_vm8, %v2899_v12, %v1160_v19 }
 0x2ed   : > { %v1169_v8 = vsel %vm1166_vm9, %v1168_v9, %v1164_v49 }
 0x2ee   : > { %v1170_v6 = vmul.f32 %v3508_v55, %v1169_v8 }
 0x2f0   : > { %2705 = vmatmul.msk.f32.vlgmr.msrb.gmra.mxu3 %vm978_vm1, %v1170_v6 }
 0x2f1   : > { %1928 = vmatpush.msrb.mxu3 %v3335_v0 }
 0x323   : > { %v1674_v61 = vpop.trf.xlu2 }
 0x324   : > { %2707 = vmatmul.msk.f32.vlgmr.msra.gmra.mxu3 %vm978_vm1, %v1674_v61 }
 0x325   : > { %2129 = vmatpush.msra.mxu3 %v2046_v26 }
 0x327   : > { %2130 = vmatpush.msra.mxu3 %v2045_v18 }
 0x329   : > { %2131 = vmatpush.msra.mxu3 %v2044_v37 }
 0x32b   : > { %v1784_v11 = vpop.trf.xlu2  ;;  %2132 = vmatpush.msra.mxu3 %v2043_v60 }
 0x32c   : > { %2709 = vmatmul.msk.f32.vlgmr.msrb.gmra.mxu1 %vm978_vm1, %v1784_v11 }
 0x32d   : > { %2254 = vmatpush.msrb.mxu1 %v2046_v26 }
 0x32f   : > { %2255 = vmatpush.msrb.mxu1 %v2045_v18 }
 0x331   : > { %2256 = vmatpush.msrb.mxu1 %v2044_v37 }
 0x333   : > { %v1894_v55 = vpop.trf.xlu2  ;;  %2257 = vmatpush.msrb.mxu1 %v2043_v60 }
 0x334   : > { %2711 = vmatmul.msk.f32.vlgmr.msrb.gmra.mxu3 %vm978_vm1, %v1894_v55 }
 0x336   : > { %v1729_v13 = vpop.trf.xlu0 }
 0x337   : > { %v1619_v16 = vpop.trf.xlu1  ;;  %2708 = vmatmul.msk.f32.vlgmr.msrb.gmra.mxu0 %vm978_vm1, %v1729_v13 }
 0x338   : > { %2706 = vmatmul.msk.f32.vlgmr.msra.gmra.mxu2 %vm978_vm1, %v1619_v16  ;;  %2213 = vmatpush.msrb.mxu0 %v2050_v30 }
 0x339   : > { %2088 = vmatpush.msra.mxu2 %v2050_v30 }
 0x33a   : > { %2214 = vmatpush.msrb.mxu0 %v2049_v22 }
 0x33b   : > { %2089 = vmatpush.msra.mxu2 %v2049_v22  ;;  %v1439_v36 = vpop.f32.mrf.mxu2 }
 0x33c   : > { %2722 = vmatmul.msk.f32.vlgmr.msra.gmra.mxu3 %vm623_vm0, %v3281_v34  ;;  %2215 = vmatpush.msrb.mxu0 %v2048_v25 }
 0x33d   : > { %2090 = vmatpush.msra.mxu2 %v2048_v25 }
 0x33e   : > { %v1839_v35 = vpop.trf.xlu0  ;;  %2216 = vmatpush.msrb.mxu0 %v2047_v32 }
 0x33f   : > { %v2004_v40 = vpop.trf.xlu1  ;;  %2091 = vmatpush.msra.mxu2 %v2047_v32 }
 0x340   : > { %2710 = vmatmul.msk.f32.vlgmr.msrb.gmra.mxu2 %vm978_vm1, %v1839_v35  ;;  %2713 = vmatmul.msk.f32.vlgmr.msra.gmra.mxu1 %vm978_vm1, %v2004_v40 }
 0x343   : > { %v1462_v2 = vpop.f32.mrf.mxu3 }
 0x344   : > { %2723 = vmatmul.msk.f32.gmra.mxu3 %vm623_vm0, %v3292_v41 }
 0x346   : > { %v1949_v34 = vpop.trf.xlu0 }
 0x347   : > { %2712 = vmatmul.msk.f32.vlgmr.msra.gmra.mxu0 %vm978_vm1, %v1949_v34  ;;  %vm2363_vm1 = vcmask 1041409  }
 0x348   : > { %2714 = vmatmul.msk.f32.vlgmr.msra.gmra.mxu2 %vm623_vm0, %v1439_v36  ;;  %2738 = vmatmul.msk.f32.vlgmr.msrb.gmra.mxu1 %vm623_vm0, %v3273_v28 }
 0x34b   : > { %v1485_v41 = vpop.f32.mrf.mxu2 }
 0x34c   : > { %2724 = vmatmul.msk.f32.gmra.mxu3 %vm623_vm0, %v3263_v24 }
 0x350   : > { %2715 = vmatmul.msk.f32.gmra.mxu2 %vm623_vm0, %v1462_v2  ;;  %2739 = vmatmul.msk.f32.gmra.mxu1 %vm623_vm0, %v3279_v31 }
 0x353   : > { %v1508_v24 = vpop.f32.mrf.mxu3 }
 0x354   : > { %2725 = vmatmul.msk.f32.gmra.mxu3 %vm623_vm0, %v3294_v42 }
 0x358   : > { %2716 = vmatmul.msk.f32.gmra.mxu2 %vm623_vm0, %v1485_v41  ;;  %2740 = vmatmul.msk.f32.gmra.mxu1 %vm623_vm0, %v3290_v38  ;;  %v3877_v38 = vld [vmem:[#allocation17_spill] sm:$0xff] }
 0x35b   : > { %v1531_v28 = vpop.f32.mrf.mxu2 }
 0x35c   : > { %2726 = vmatmul.msk.f32.gmra.mxu3 %vm623_vm0, %v3324_v59 }
 0x360   : > { %2717 = vmatmul.msk.f32.gmra.mxu2 %vm623_vm0, %v1508_v24  ;;  %2741 = vmatmul.msk.f32.gmra.mxu1 %vm623_vm0, %v3302_v46 }
 0x363   : > { %v1554_v31 = vpop.f32.mrf.mxu3 }
 0x364   : > { %2727 = vmatmul.msk.f32.gmra.mxu3 %vm623_vm0, %v3335_v0 }
 0x368   : > { %2718 = vmatmul.msk.f32.gmra.mxu2 %vm623_vm0, %v1531_v28  ;;  %2742 = vmatmul.msk.f32.gmra.mxu1 %vm623_vm0, %v3310_v52 }
 0x36b   : > { %v1577_v42 = vpop.f32.mrf.mxu2 }
 0x36c   : > { %2728 = vmatmul.msk.f32.gmra.mxu3 %vm623_vm0, %v3312_v53 }
 0x370   : > { %2719 = vmatmul.msk.f32.gmra.mxu2 %vm623_vm0, %v1554_v31  ;;  %2743 = vmatmul.msk.f32.gmra.mxu1 %vm623_vm0, %v3322_v58 }
 0x373   : > { %v1600_v46 = vpop.f32.mrf.mxu3 }
 0x374   : > { %2729 = vmatmul.msk.f32.gmra.mxu3 %vm623_vm0, %v3877_v38 }
 0x378   : > { %2720 = vmatmul.msk.f32.gmra.mxu2 %vm623_vm0, %v1577_v42  ;;  %2744 = vmatmul.msk.f32.gmra.mxu1 %vm623_vm0, %v3337_v1 }
 0x380   : > { %2721 = vmatmul.msk.f32.gmra.mxu2 %vm623_vm0, %v1600_v46  ;;  %2745 = vmatmul.msk.f32.gmra.mxu1 %vm623_vm0, %v3344_v4 }
 0x3a7   : > { %v1710_v52 = vpop.f32.mrf.mxu3 }
 0x3a9   : > { %v1820_v17 = vpop.f32.mrf.mxu1 }
 0x3b4   : > { %v1765_v44 = vpop.f32.mrf.mxu0 }
 0x3b7   : > { %v1930_v53 = vpop.f32.mrf.mxu3 }
 0x3bb   : > { %v1655_v59 = vpop.f32.mrf.mxu2 }
 0x3bc   : > { %2730 = vmatmul.msk.f32.vlgmr.msrb.gmra.mxu0 %vm623_vm0, %v1655_v59 }
 0x3bd   : > { %v2040_v54 = vpop.f32.mrf.mxu1 }
 0x3bf   : > { %v2134_v58 = vpop.f32.mrf.mxu3 }
 0x3c3   : > { %v1875_v0 = vpop.f32.mrf.mxu2 }
 0x3c4   : > { %2731 = vmatmul.msk.f32.gmra.mxu0 %vm623_vm0, %v1710_v52  ;;  %v1985_v39 = vpop.f32.mrf.mxu0 }
 0x3c7   : > { %v2137_v50 = vpop.f32.mrf.mxu3 }
 0x3cb   : > { %v2093_v15 = vpop.f32.mrf.mxu2 }
 0x3cc   : > { %2732 = vmatmul.msk.f32.gmra.mxu0 %vm623_vm0, %v1765_v44  ;;  %v2135_v45 = vadd.f32 %v2134_v58, %v2093_v15 }
 0x3ce   : > { %v2161_v5 = vadd.f32 %v3736_v7, %v2135_v45 }
 0x3cf   : > { %v2140_v1 = vpop.f32.mrf.mxu3 }
 0x3d0   : > { %v2169_v3 = vmax.f32 %v2161_v5, 0.0 }
 0x3d2   : > { %v2299_v61 = vsel %vm623_vm0, %v2169_v3, 0.0 }
 0x3d3   : > { %v2096_v43 = vpop.f32.mrf.mxu2  ;;  %v2300_v16 = vrot.slane %v2299_v61, 4 }
 0x3d4   : > { %2733 = vmatmul.msk.f32.gmra.mxu0 %vm623_vm0, %v1820_v17  ;;  %v2138_v48 = vadd.f32 %v2137_v50, %v2096_v43 }
 0x3d5   : > { %v2301_v41 = vadd.f32 %v2300_v16, %v2299_v61 }
 0x3d6   : > { %v2162_v51 = vadd.f32 %v3736_v7, %v2138_v48 }
 0x3d7   : > { %v2143_v4 = vpop.f32.mrf.mxu3 }
 0x3d8   : > { %v2170_v57 = vmax.f32 %v2162_v51, 0.0 }
 0x3da   : > { %v2306_v8 = vsel %vm623_vm0, %v2170_v57, 0.0 }
 0x3db   : > { %v2099_v20 = vpop.f32.mrf.mxu2  ;;  %v2307_v60 = vrot.slane %v2306_v8, 4 }
 0x3dc   : > { %2734 = vmatmul.msk.f32.gmra.mxu0 %vm623_vm0, %v1875_v0  ;;  %v2141_v47 = vadd.f32 %v2140_v1, %v2099_v20 }
 0x3dd   : > { %v2308_v40 = vadd.f32 %v2307_v60, %v2306_v8 }
 0x3de   : > { %v2163_v12 = vadd.f32 %v3736_v7, %v2141_v47 }
 0x3df   : > { %v2146_v21 = vpop.f32.mrf.mxu3  ;;  %v2309_v38 = vrot.slane %v2308_v40, 2 }
 0x3e0   : > { %v2171_v27 = vmax.f32 %v2163_v12, 0.0 }
 0x3e1   : > { %v2310_v1 = vadd.f32 %v2309_v38, %v2308_v40 }
 0x3e2   : > { %v2313_v26 = vsel %vm623_vm0, %v2171_v27, 0.0 }
 0x3e3   : > { %v2102_v14 = vpop.f32.mrf.mxu2  ;;  %v2314_v13 = vrot.slane %v2313_v26, 4 }
 0x3e4   : > { %2735 = vmatmul.msk.f32.gmra.mxu0 %vm623_vm0, %v1930_v53  ;;  %v2144_v10 = vadd.f32 %v2143_v4, %v2102_v14  ;;  %v2302_v53 = vrot.slane %v2301_v41, 2 }
 0x3e5   : > { %v2315_v34 = vadd.f32 %v2314_v13, %v2313_v26 }
 0x3e6   : > { %v2164_v56 = vadd.f32 %v3736_v7, %v2144_v10  ;;  %v2303_v14 = vadd.f32 %v2302_v53, %v2301_v41 }
 0x3e7   : > { %v2149_v29 = vpop.f32.mrf.mxu3  ;;  %v2316_v46 = vrot.slane %v2315_v34, 2 }
 0x3e8   : > { %v2172_v19 = vmax.f32 %v2164_v56, 0.0  ;;  %v2304_v12 = vrot.slane %v2303_v14, 1 }
 0x3e9   : > { %v2317_v4 = vadd.f32 %v2316_v46, %v2315_v34 }
 0x3ea   : > { %v2320_v18 = vsel %vm623_vm0, %v2172_v19, 0.0  ;;  %v2305_v3 = vadd.f32 %v2304_v12, %v2303_v14 }
 0x3eb   : > { %v2105_v33 = vpop.f32.mrf.mxu2  ;;  %v2321_v22 = vrot.slane %v2320_v18, 4  ;;  %v2318_v10 = vrot.slane %v2317_v4, 1 }
 0x3ec   : > { %2736 = vmatmul.msk.f32.gmra.mxu0 %vm623_vm0, %v1985_v39  ;;  %v2147_v23 = vadd.f32 %v2146_v21, %v2105_v33  ;;  %v2311_v33 = vrot.slane %v2310_v1, 1 }
 0x3ed   : > { %v2322_v24 = vadd.f32 %v2321_v22, %v2320_v18  ;;  %v2319_v27 = vadd.f32 %v2318_v10, %v2317_v4 }
 0x3ee   : > { %v2165_v63 = vadd.f32 %v3736_v7, %v2147_v23 }
 0x3ef   : > { %v2152_v55 = vpop.f32.mrf.mxu3  ;;  %v2323_v59 = vrot.slane %v2322_v24, 2 }
 0x3f0   : > { %v2173_v49 = vmax.f32 %v2165_v63, 0.0  ;;  %v2312_v63 = vadd.f32 %v2311_v33, %v2310_v1 }
 0x3f1   : > { %v2324_v21 = vadd.f32 %v2323_v59, %v2322_v24 }
 0x3f2   : > { %v2327_v11 = vsel %vm623_vm0, %v2173_v49, 0.0  ;;  %v2364_v8 = vsel %vm2363_vm1, %v2312_v63, %v2305_v3 }
 0x3f3   : > { %v2108_v62 = vpop.f32.mrf.mxu2  ;;  %v2328_v32 = vrot.slane %v2327_v11, 4  ;;  %v2366_v61 = vsel %vm2365_vm10, %v2319_v27, %v2364_v8 }
 0x3f4   : > { %v2150_v9 = vadd.f32 %v2149_v29, %v2108_v62  ;;  %2737 = vmatmul.msk.f32.gmra.mxu0 %vm623_vm0, %v2040_v54  ;;  %v2325_v29 = vrot.slane %v2324_v21, 1 }
 0x3f5   : > { %v2329_v28 = vadd.f32 %v2328_v32, %v2327_v11 }
 0x3f6   : > { %v2166_v6 = vadd.f32 %v3736_v7, %v2150_v9  ;;  %v2326_v19 = vadd.f32 %v2325_v29, %v2324_v21 }
 0x3f7   : > { %v2155_v58 = vpop.f32.mrf.mxu3  ;;  %v2330_v44 = vrot.slane %v2329_v28, 2 }
 0x3f8   : > { %v2174_v37 = vmax.f32 %v2166_v6, 0.0 }
 0x3f9   : > { %v2331_v48 = vadd.f32 %v2330_v44, %v2329_v28 }
 0x3fa   : > { %v2334_v30 = vsel %vm623_vm0, %v2174_v37, 0.0  ;;  %v2368_v37 = vsel %vm2367_vm11, %v2326_v19, %v2366_v61 }
 0x3fb   : > { %v2111_v25 = vpop.f32.mrf.mxu2  ;;  %v2335_v36 = vrot.slane %v2334_v30, 4  ;;  %v2332_v56 = vrot.slane %v2331_v48, 1 }
 0x3fc   : > { %v2153_v35 = vadd.f32 %v2152_v55, %v2111_v25 }
 0x3fd   : > { %v2336_v42 = vadd.f32 %v2335_v36, %v2334_v30  ;;  %v2333_v49 = vadd.f32 %v2332_v56, %v2331_v48 }
 0x3fe   : > { %v2167_v2 = vadd.f32 %v3736_v7, %v2153_v35 }
 0x3ff   : > { %v2337_v17 = vrot.slane %v2336_v42, 2  ;;  %v2370_v11 = vsel %vm2369_vm12, %v2333_v49, %v2368_v37 }
 0x400   : > { %v2175_v31 = vmax.f32 %v2167_v2, 0.0 }
 0x401   : > { %v2338_v45 = vadd.f32 %v2337_v17, %v2336_v42 }
 0x402   : > { %v2341_v52 = vsel %vm623_vm0, %v2175_v31, 0.0 }
 0x403   : > { %v2342_v0 = vrot.slane %v2341_v52, 4  ;;  %v2114_v50 = vpop.f32.mrf.mxu2  ;;  %v2339_v57 = vrot.slane %v2338_v45, 1 }
 0x404   : > { %v2156_v15 = vadd.f32 %v2155_v58, %v2114_v50 }
 0x405   : > { %v2343_v43 = vadd.f32 %v2342_v0, %v2341_v52  ;;  %v2340_v6 = vadd.f32 %v2339_v57, %v2338_v45 }
 0x406   : > { %v2168_v20 = vadd.f32 %v3736_v7, %v2156_v15 }
 0x407   : > { %v2344_v39 = vrot.slane %v2343_v43, 2  ;;  %v2372_v13 = vsel %vm2371_vm13, %v2340_v6, %v2370_v11 }
 0x408   : > { %v2176_v47 = vmax.f32 %v2168_v20, 0.0 }
 0x409   : > { %v2345_v23 = vadd.f32 %v2344_v39, %v2343_v43 }
 0x40a   : > { %v2348_v51 = vsel %vm623_vm0, %v2176_v47, 0.0 }
 0x40b   : > { %v2349_v5 = vrot.slane %v2348_v51, 4  ;;  %v2346_v62 = vrot.slane %v2345_v23, 1 }
 0x40d   : > { %v2350_v54 = vadd.f32 %v2349_v5, %v2348_v51  ;;  %v2347_v18 = vadd.f32 %v2346_v62, %v2345_v23 }
 0x40f   : > { %v2351_v9 = vrot.slane %v2350_v54, 2  ;;  %v2374_v30 = vsel %vm2373_vm14, %v2347_v18, %v2372_v13 }
 0x411   : > { %v2352_v26 = vadd.f32 %v2351_v9, %v2350_v54 }
 0x413   : > { %v2353_v60 = vrot.slane %v2352_v26, 1 }
 0x415   : > { %v2354_v55 = vadd.f32 %v2353_v60, %v2352_v26 }
 0x417   : > { %v2376_v16 = vsel %vm2375_vm15, %v2354_v55, %v2374_v30 }
 0x418   : > { %2378 = vst.msk [vmem:[%s455_s18] sm:$0xff] %vm623_vm0, %v2376_v16 }
 0x419   : > { %3017 = shalt.err (!%p3014_p8)
}
 0x41a   : > { %2764 = dma.vmem_to_hbm [thread:$0]  (%p3193_p5), %s2471_s20, 128, %s2473_s21, %s2453_s26   ;;  %v2259_v22 = vpop.f32.mrf.mxu1 }
 0x41b   : > { %s2482_s18 = scalar_lea.hbm %s3853_s10, %s3242_s6  ;;  %s462_s20 = scalar_lea.vmem [#allocation9], %s2656_s28 }
 0x41c   : > { %s2484_s21 = sshll.u32 %s462_s20, 4  ;;  %s2486_s26 = sshll.u32 %s2482_s18, 4  ;;  %s2485_s21 = int_to_ptr.vmem [resolvable:$true] %s2484_s21  ;;  %s2487_s26 = int_to_ptr.hbm [resolvable:$true] %s2486_s26 }
 0x41d   : > { %s2458_s6 = scalar_lea.sflag [#allocation10], %s3757_s25  ;;  %s3032_s27 = sshra.s32 %s2487_s26, 4  ;;  %s3033_s27 = int_to_ptr.hbm [resolvable:$true] %s3032_s27 }
 0x41e   : > { %s3034_s28 = scalar_lea.hbm %s3033_s27, 8  ;;  %s3038_s4 = scalar_lea.hbm %s3853_s10, 16 }
 0x41f   : > { %p3035_p9 = scmp.ne.s32.totalorder %s3033_s27, %s3034_s28  ;;  %p3039_p12 = scmp.lt.s32.totalorder %s3033_s27, %s3853_s10 }
 0x420   : > { %p3040_p13 = scmp.lt.s32.totalorder %s3038_s4, %s3034_s28 }
 0x421   : > { %p3036_p10 = pnand %p3035_p9, %p3193_p5 }
 0x422   : > { %v2262_v25 = vpop.f32.mrf.mxu1  ;;  %p3041_p0 = por %p3040_p13, %p3039_p12 }
 0x423   : > { %p3037_p11 = pneg %p3036_p10 }
 0x425   : > { %p3042_p1 = pnand %p3041_p0, %p3037_p11 }
 0x42a   : > { %v2265_v35 = vpop.f32.mrf.mxu1 }
 0x432   : > { %v2268_v36 = vpop.f32.mrf.mxu1 }
 0x439   : > { %v2218_v32 = vpop.f32.mrf.mxu0 }
 0x43a   : > { %v2271_v41 = vpop.f32.mrf.mxu1  ;;  %v2260_v38 = vadd.f32 %v2259_v22, %v2218_v32 }
 0x43c   : > { %v2283_v58 = vadd.f32 %v3736_v7, %v2260_v38 }
 0x43e   : > { %v2291_v17 = vmax.f32 %v2283_v58, 0.0 }
 0x440   : > { %v2379_v48 = vsel %vm623_vm0, %v2291_v17, 0.0 }
 0x441   : > { %v2221_v40 = vpop.f32.mrf.mxu0  ;;  %v2380_v29 = vrot.slane %v2379_v48, 4 }
 0x442   : > { %v2263_v24 = vadd.f32 %v2262_v25, %v2221_v40  ;;  %v2274_v53 = vpop.f32.mrf.mxu1 }
 0x443   : > { %v2381_v19 = vadd.f32 %v2380_v29, %v2379_v48 }
 0x444   : > { %v2284_v52 = vadd.f32 %v3736_v7, %v2263_v24 }
 0x445   : > { %v2382_v60 = vrot.slane %v2381_v19, 2 }
 0x446   : > { %v2292_v44 = vmax.f32 %v2284_v52, 0.0 }
 0x448   : > { %v2386_v14 = vsel %vm623_vm0, %v2292_v44, 0.0 }
 0x449   : > { %v2224_v34 = vpop.f32.mrf.mxu0  ;;  %v2387_v10 = vrot.slane %v2386_v14, 4 }
 0x44a   : > { %v2266_v28 = vadd.f32 %v2265_v35, %v2224_v34  ;;  %v2277_v45 = vpop.f32.mrf.mxu1 }
 0x44b   : > { %v2388_v54 = vadd.f32 %v2387_v10, %v2386_v14 }
 0x44c   : > { %v2285_v59 = vadd.f32 %v3736_v7, %v2266_v28 }
 0x44d   : > { %v2389_v6 = vrot.slane %v2388_v54, 2 }
 0x44e   : > { %v2293_v15 = vmax.f32 %v2285_v59, 0.0 }
 0x44f   : > { %v2390_v22 = vadd.f32 %v2389_v6, %v2388_v54 }
 0x450   : > { %v2393_v39 = vsel %vm623_vm0, %v2293_v15, 0.0 }
 0x451   : > { %v2227_v2 = vpop.f32.mrf.mxu0  ;;  %v2394_v51 = vrot.slane %v2393_v39, 4  ;;  %v2391_v28 = vrot.slane %v2390_v22, 1 }
 0x452   : > { %v2269_v42 = vadd.f32 %v2268_v36, %v2227_v2  ;;  %v2280_v37 = vpop.f32.mrf.mxu1  ;;  %v2383_v36 = vadd.f32 %v2382_v60, %v2381_v19 }
 0x453   : > { %v2395_v62 = vadd.f32 %v2394_v51, %v2393_v39 }
 0x454   : > { %v2286_v0 = vadd.f32 %v3736_v7, %v2269_v42  ;;  %v2384_v52 = vrot.slane %v2383_v36, 1 }
 0x455   : > { %v2396_v61 = vrot.slane %v2395_v62, 2 }
 0x456   : > { %v2294_v43 = vmax.f32 %v2286_v0, 0.0  ;;  %v2392_v0 = vadd.f32 %v2391_v28, %v2390_v22 }
 0x457   : > { %v2397_v35 = vadd.f32 %v2396_v61, %v2395_v62 }
 0x458   : > { %v2400_v47 = vsel %vm623_vm0, %v2294_v43, 0.0 }
 0x459   : > { %v2230_v31 = vpop.f32.mrf.mxu0  ;;  %v2401_v5 = vrot.slane %v2400_v47, 4  ;;  %v2398_v38 = vrot.slane %v2397_v35, 1 }
 0x45a   : > { %v2272_v46 = vadd.f32 %v2271_v41, %v2230_v31 }
 0x45b   : > { %v2402_v9 = vadd.f32 %v2401_v5, %v2400_v47  ;;  %v2399_v44 = vadd.f32 %v2398_v38, %v2397_v35 }
 0x45c   : > { %v2287_v50 = vadd.f32 %v3736_v7, %v2272_v46 }
 0x45d   : > { %v2403_v11 = vrot.slane %v2402_v9, 2 }
 0x45e   : > { %v2295_v20 = vmax.f32 %v2287_v50, 0.0 }
 0x45f   : > { %v2404_v34 = vadd.f32 %v2403_v11, %v2402_v9 }
 0x460   : > { %v2407_v23 = vsel %vm623_vm0, %v2295_v20, 0.0 }
 0x461   : > { %v2233_v1 = vpop.f32.mrf.mxu0  ;;  %v2408_v63 = vrot.slane %v2407_v23, 4 }
 0x462   : > { %v2275_v4 = vadd.f32 %v2274_v53, %v2233_v1  ;;  %v2405_v53 = vrot.slane %v2404_v34, 1  ;;  %v2385_v1 = vadd.f32 %v2384_v52, %v2383_v36 }
 0x463   : > { %v2409_v49 = vadd.f32 %v2408_v63, %v2407_v23 }
 0x464   : > { %v2288_v21 = vadd.f32 %v3736_v7, %v2275_v4  ;;  %v2406_v17 = vadd.f32 %v2405_v53, %v2404_v34  ;;  %v2443_v20 = vsel %vm2363_vm1, %v2392_v0, %v2385_v1 }
 0x465   : > { %v2410_v30 = vrot.slane %v2409_v49, 2  ;;  %v2444_v39 = vsel %vm2365_vm10, %v2399_v44, %v2443_v20 }
 0x466   : > { %v2296_v33 = vmax.f32 %v2288_v21, 0.0  ;;  %v2445_v47 = vsel %vm2367_vm11, %v2406_v17, %v2444_v39 }
 0x467   : > { %v2411_v41 = vadd.f32 %v2410_v30, %v2409_v49 }
 0x468   : > { %v2414_v12 = vsel %vm623_vm0, %v2296_v33, 0.0 }
 0x469   : > { %v2236_v56 = vpop.f32.mrf.mxu0  ;;  %v2415_v27 = vrot.slane %v2414_v12, 4  ;;  %v2412_v58 = vrot.slane %v2411_v41, 1 }
 0x46a   : > { %v2278_v57 = vadd.f32 %v2277_v45, %v2236_v56 }
 0x46b   : > { %v2416_v26 = vadd.f32 %v2415_v27, %v2414_v12  ;;  %v2413_v4 = vadd.f32 %v2412_v58, %v2411_v41 }
 0x46c   : > { %v2289_v3 = vadd.f32 %v3736_v7, %v2278_v57 }
 0x46d   : > { %v2417_v25 = vrot.slane %v2416_v26, 2  ;;  %v2446_v45 = vsel %vm2369_vm12, %v2413_v4, %v2445_v47 }
 0x46e   : > { %v2297_v8 = vmax.f32 %v2289_v3, 0.0 }
 0x46f   : > { %v2418_v31 = vadd.f32 %v2417_v25, %v2416_v26 }
 0x470   : > { %v2421_v18 = vsel %vm623_vm0, %v2297_v8, 0.0 }
 0x471   : > { %v2422_v55 = vrot.slane %v2421_v18, 4  ;;  %v2239_v13 = vpop.f32.mrf.mxu0  ;;  %v2419_v50 = vrot.slane %v2418_v31, 1 }
 0x472   : > { %v2281_v16 = vadd.f32 %v2280_v37, %v2239_v13 }
 0x473   : > { %v2423_v32 = vadd.f32 %v2422_v55, %v2421_v18  ;;  %v2420_v14 = vadd.f32 %v2419_v50, %v2418_v31 }
 0x474   : > { %v2290_v40 = vadd.f32 %v3736_v7, %v2281_v16 }
 0x475   : > { %v2424_v2 = vrot.slane %v2423_v32, 2  ;;  %v2447_v23 = vsel %vm2371_vm13, %v2420_v14, %v2446_v45 }
 0x476   : > { %v2298_v24 = vmax.f32 %v2290_v40, 0.0 }
 0x477   : > { %v2425_v42 = vadd.f32 %v2424_v2, %v2423_v32 }
 0x478   : > { %v2428_v46 = vsel %vm623_vm0, %v2298_v24, 0.0 }
 0x479   : > { %v2429_v59 = vrot.slane %v2428_v46, 4  ;;  %v2426_v15 = vrot.slane %v2425_v42, 1 }
 0x47b   : > { %v2430_v7 = vadd.f32 %v2429_v59, %v2428_v46  ;;  %v2427_v48 = vadd.f32 %v2426_v15, %v2425_v42 }
 0x47d   : > { %v2431_v43 = vrot.slane %v2430_v7, 2  ;;  %v2448_v51 = vsel %vm2373_vm14, %v2427_v48, %v2447_v23 }
 0x47f   : > { %v2432_v21 = vadd.f32 %v2431_v43, %v2430_v7 }
 0x481   : > { %v2433_v33 = vrot.slane %v2432_v21, 1 }
 0x483   : > { %v2434_v10 = vadd.f32 %v2433_v33, %v2432_v21 }
 0x485   : > { %v2449_v12 = vsel %vm2375_vm15, %v2434_v10, %v2448_v51 }
 0x486   : > { %2451 = vst.msk [vmem:[%s462_s20] sm:$0xff] %vm623_vm0, %v2449_v12 }
 0x487   : > { %3045 = shalt.err (!%p3042_p1)
}
 0x488   : > { %2765 = dma.vmem_to_hbm [thread:$0]  (%p3193_p5), %s2485_s21, 128, %s2487_s26, %s2458_s6  }
 0x489 PF: > { %p2791_p2 = scmp.ge.s32.totalorder %s3092_s16, 2  ;;  %s2498_s25 = sand.u32 1, %s3080_s13  }
 0x48a   : > { %s2499_s17 = scalar_lea.sflag [#allocation4], %s2498_s25 }
 0x48b   : > { %p2779_p3 = pnand %p2791_p2, %p3197_p6 }
 0x48d   : > { %p2780_p4 = pneg %p2779_p3 }
 0x48f   : > { %3071 = dma.done.wait (%p2780_p4), %s2499_s17, 128  }
 0x490   : > { %3073 = vsyncadd (%p2780_p4), %s2499_s17, 4294967168  ;;  %s2509_s11 = scalar_lea.sflag [#allocation10], %s2498_s25 }
 0x491   : > { %3075 = dma.done.wait (%p2780_p4), %s2509_s11, 128  }
 0x492   : > { %3077 = vsyncadd (%p2780_p4), %s2509_s11, 4294967168  ;;  %s3878_s12 = sld [smem:[#allocation15_spill]]  ;;  %p26_p5 = scmp.ge.s32.totalorder %s3180_s19, 4  }
 0x493   : > { %s3879_s15 = sld [smem:[#allocation16_spill]]  ;;  %s3880_s13 = smov %s3084_s14 }
 0x494   : > { %s3882_s16 = smov %s3180_s19  ;;  %28 = sbr.rel (!%p26_p5) target bundleno = 10 (0xa), region = 130 }
 0x498   : > { %s3881_s14 = smov %s3878_s12 }
 0x499   :  { %2515 = vsyncpa [#allocation3], 1 }
 0x49a   :  { %2517 = vsyncpa [#allocation3 + $0x1], 1 }
 0x49b   :  { %2518 = vsyncpa [#allocation6], 1 }
 0x49c   :  { %2519 = vsyncpa [#allocation4], 1 }
 0x49d   :  { %2521 = vsyncpa [#allocation4 + $0x1], 1 }
 0x49e   :  { %2522 = vsyncpa [#allocation10], 1 }
 0x49f   :  { %2524 = vsyncpa [#allocation10 + $0x1], 1 }

</bundles_post_ra>
